<compile_context>
chip_gen: v6e
topology: v6e:2x2x1
jax: 0.10.0
libtpu: 0.0.40
codegen_flags: <defaults>
</compile_context>

<pallas_src>
import functools

import jax
import jax.numpy as jnp
from jax.experimental import pallas as pl
from jax.experimental.pallas import tpu as pltpu

LEAKY_SLOPE = 0.2
BN_EPS = 1e-5
ASTROUS_LIST = (1, 2, 4, 8, 1, 1)

_PARALLEL = pltpu.CompilerParams(dimension_semantics=("parallel",))


# ---------------------------------------------------------------------------
# Pallas kernels
# ---------------------------------------------------------------------------
def _conv_stats_kernel(cols_ref, w_ref, b_ref, y_ref, s_ref, ss_ref):
    """Conv tile (lane dense) + per-channel partial BN statistics.

    cols_ref : (9*Cin, TP)  im2col slab tile, spatial on lanes
    w_ref    : (Cout, 9*Cin)
    b_ref    : (Cout, 1)
    y_ref    : (Cout, TP)   conv + bias output tile (lane dense)
    s_ref    : (Cout, 1)    per-channel partial sum for this tile
    ss_ref   : (Cout, 1)    per-channel partial sum of squares
    """
    y = jnp.dot(w_ref[...], cols_ref[...], preferred_element_type=jnp.float32)
    y = y + b_ref[...]
    y_ref[...] = y
    s_ref[...] = jnp.sum(y, axis=1, keepdims=True)
    ss_ref[...] = jnp.sum(y * y, axis=1, keepdims=True)


def _bn_lrelu_kernel(y_ref, scale_ref, shift_ref, out_ref):
    """scale/shift (folded BN) + LeakyReLU, lane-dense tile."""
    y = y_ref[...] * scale_ref[...] + shift_ref[...]
    out_ref[...] = jnp.where(y > 0, y, LEAKY_SLOPE * y)


def _bn_lrelu_res_kernel(y_ref, scale_ref, shift_ref, res_ref, out_ref):
    """scale/shift (folded BN) + LeakyReLU + residual add, lane-dense tile."""
    y = y_ref[...] * scale_ref[...] + shift_ref[...]
    y = jnp.where(y > 0, y, LEAKY_SLOPE * y)
    out_ref[...] = y + res_ref[...]


def _out_conv_kernel(cols_ref, disp_ref, w_ref, b_ref, out_ref):
    """Cout=1 conv as VPU broadcast-FMA + sublane reduce, + disparity add + ReLU."""
    y = jnp.sum(cols_ref[...] * w_ref[...], axis=0, keepdims=True)  # (1, TP)
    y = y + b_ref[...] + disp_ref[...]
    out_ref[...] = jnp.maximum(y, 0.0)


# ---------------------------------------------------------------------------
# Wrapper helpers
# ---------------------------------------------------------------------------
def _pick_tile_p(P, cap=2048):
    """Largest multiple-of-128 divisor of P that is <= cap (else full P)."""
    if P <= 128 or P % 128 != 0:
        return P
    best = 128
    for t in range(128, min(P, cap) + 1, 128):
        if P % t == 0:
            best = t
    return best


def _im2col(a_flat, nhw, cin, dil):
    """(Cin, P) activation -> (9*Cin, P) lane-dense im2col slab (3x3, stride 1,
    pad = dil), tap-major / channel-minor row order."""
    N, H, W = nhw
    x = a_flat.reshape(cin, N, H, W)
    xp = jnp.pad(x, ((0, 0), (0, 0), (dil, dil), (dil, dil)))
    taps = [xp[:, :, dy * dil:dy * dil + H, dx * dil:dx * dil + W]
            for dy in range(3) for dx in range(3)]
    return jnp.stack(taps, axis=0).reshape(9 * cin, N * H * W)


def _conv_bn_lrelu(a_flat, nhw, w, b, gamma, beta, dil, residual, tile_p):
    """Conv3x3(dil) + BatchNorm(train) + LeakyReLU(0.2) (+ residual), lane-dense."""
    cin, P = a_flat.shape
    cout = w.shape[0]
    K = 9 * cin
    assert P % tile_p == 0, f"P={P} must be divisible by tile_p={tile_p}"
    T = P // tile_p
    if residual:
        assert cin == cout, "residual add requires Cin == Cout (downsample=None)"

    cols = _im2col(a_flat, nhw, cin, dil)                             # (9Cin, P)
    w_flat = jnp.transpose(w, (0, 2, 3, 1)).reshape(cout, K).astype(jnp.float32)
    b2 = b.reshape(cout, 1).astype(jnp.float32)

    # Phase 1: pipelined conv + bias, with per-tile partial BN stats in the epilogue.
    y, s_p, ss_p = pl.pallas_call(
        _conv_stats_kernel,
        out_shape=(
            jax.ShapeDtypeStruct((cout, P), jnp.float32),
            jax.ShapeDtypeStruct((T * cout, 1), jnp.float32),
            jax.ShapeDtypeStruct((T * cout, 1), jnp.float32),
        ),
        grid=(T,),
        in_specs=[
            pl.BlockSpec((K, tile_p), lambda t: (0, t)),
            pl.BlockSpec((cout, K), lambda t: (0, 0)),
            pl.BlockSpec((cout, 1), lambda t: (0, 0)),
        ],
        out_specs=(
            pl.BlockSpec((cout, tile_p), lambda t: (0, t)),
            pl.BlockSpec((cout, 1), lambda t: (t, 0)),
            pl.BlockSpec((cout, 1), lambda t: (t, 0)),
        ),
        compiler_params=_PARALLEL,
    )(cols, w_flat, b2)

    # Tiny cross-tile reduction (T*Cout scalars) + fold BN into scale/shift.
    mean = (jnp.sum(s_p.reshape(T, cout), axis=0) / P).reshape(cout, 1)
    ex2 = (jnp.sum(ss_p.reshape(T, cout), axis=0) / P).reshape(cout, 1)
    var = jnp.maximum(ex2 - mean * mean, 0.0)          # biased (training) variance
    scale = gamma.reshape(cout, 1) * jax.lax.rsqrt(var + BN_EPS)
    shift = beta.reshape(cout, 1) - mean * scale

    # Phase 2: pipelined normalize + LeakyReLU (+ residual).
    if residual:
        kern = _bn_lrelu_res_kernel
        extra_specs = [pl.BlockSpec((cout, tile_p), lambda t: (0, t))]
        extra_args = (a_flat,)
    else:
        kern = _bn_lrelu_kernel
        extra_specs = []
        extra_args = ()

    return pl.pallas_call(
        kern,
        out_shape=jax.ShapeDtypeStruct((cout, P), jnp.float32),
        grid=(T,),
        in_specs=[
            pl.BlockSpec((cout, tile_p), lambda t: (0, t)),
            pl.BlockSpec((cout, 1), lambda t: (0, 0)),
            pl.BlockSpec((cout, 1), lambda t: (0, 0)),
        ] + extra_specs,
        out_specs=pl.BlockSpec((cout, tile_p), lambda t: (0, t)),
        compiler_params=_PARALLEL,
    )(y, scale, shift, *extra_args)


def _out_conv_relu(a_flat, nhw, w, b, disp_flat, tile_p):
    """Conv3x3(32->1) + twice_disparity add + ReLU, fused, lane-dense."""
    cin, P = a_flat.shape
    K = 9 * cin
    assert P % tile_p == 0
    T = P // tile_p

    cols = _im2col(a_flat, nhw, cin, 1)                               # (9Cin, P)
    w_col = jnp.transpose(w, (2, 3, 1, 0)).reshape(K, 1).astype(jnp.float32)
    b2 = b.reshape(1, 1).astype(jnp.float32)

    return pl.pallas_call(
        _out_conv_kernel,
        out_shape=jax.ShapeDtypeStruct((1, P), jnp.float32),
        grid=(T,),
        in_specs=[
            pl.BlockSpec((K, tile_p), lambda t: (0, t)),
            pl.BlockSpec((1, tile_p), lambda t: (0, t)),
            pl.BlockSpec((K, 1), lambda t: (0, 0)),
            pl.BlockSpec((1, 1), lambda t: (0, 0)),
        ],
        out_specs=pl.BlockSpec((1, tile_p), lambda t: (0, t)),
        compiler_params=_PARALLEL,
    )(cols, disp_flat, w_col, b2)


def edge_aware_refinement_forward(low_disparity, rgb, params, tile_p=None):
    """EdgeAwareRefinement.forward.  low_disparity: (N,h,w), rgb: (N,3,H,W) -> (N,H,W)."""
    N, _, w_low = low_disparity.shape
    _, _, H, W = rgb.shape
    P = N * H * W
    if tile_p is None:
        tile_p = _pick_tile_p(P)

    # Bilinear upsample (align_corners=False, half-pixel centers) -- wrapper side.
    twice = jax.image.resize(low_disparity[:, None].astype(jnp.float32),
                             (N, 1, H, W), method="bilinear")
    if W / w_low >= 1.5:            # static shape-based branch, as in the module
        twice = twice * 8.0

    x = jnp.concatenate([twice, rgb.astype(jnp.float32)], axis=1)     # (N, 4, H, W)
    a = jnp.transpose(x, (1, 0, 2, 3)).reshape(x.shape[1], P)         # (C, P) lane dense

    a = _conv_bn_lrelu(a, (N, H, W), params["feat_w"], params["feat_b"],
                       params["feat_g"], params["feat_be"],
                       dil=1, residual=False, tile_p=tile_p)
    for i, d in enumerate(ASTROUS_LIST):
        a = _conv_bn_lrelu(a, (N, H, W), params[f"blk{i}_w"], params[f"blk{i}_b"],
                           params[f"blk{i}_g"], params[f"blk{i}_be"],
                           dil=d, residual=True, tile_p=tile_p)

    disp_flat = jnp.transpose(twice, (1, 0, 2, 3)).reshape(1, P)
    out_flat = _out_conv_relu(a, (N, H, W), params["out_w"], params["out_b"],
                              disp_flat, tile_p)
    return out_flat.reshape(N, H, W)


# ---------------------------------------------------------------------------
# Pure-JAX reference (matches PyTorch training-mode forward)
# ---------------------------------------------------------------------------
def _conv2d_ref(x, w, b, pad, dil):
    y = jax.lax.conv_general_dilated(
        x, w, window_strides=(1, 1), padding=((pad, pad), (pad, pad)),
        rhs_dilation=(dil, dil), dimension_numbers=("NCHW", "OIHW", "NCHW"))
    return y + b[None, :, None, None]


def _bn_lrelu_ref(y, g, be):
    mean = jnp.mean(y, axis=(0, 2, 3), keepdims=True)
    var = jnp.mean((y - mean) ** 2, axis=(0, 2, 3), keepdims=True)
    y = (y - mean) * jax.lax.rsqrt(var + BN_EPS)
    y = y * g[None, :, None, None] + be[None, :, None, None]
    return jnp.where(y > 0, y, LEAKY_SLOPE * y)


def reference_forward(low_disparity, rgb, params):
    N, _, w_low = low_disparity.shape
    _, _, H, W = rgb.shape
    twice = jax.image.resize(low_disparity[:, None].astype(jnp.float32),
                             (N, 1, H, W), method="bilinear")
    if W / w_low >= 1.5:
        twice = twice * 8.0
    x = jnp.concatenate([twice, rgb.astype(jnp.float32)], axis=1)
    y = _bn_lrelu_ref(_conv2d_ref(x, params["feat_w"], params["feat_b"], 1, 1),
                      params["feat_g"], params["feat_be"])
    for i, d in enumerate(ASTROUS_LIST):
        pad = d if d > 1 else 1
        y = y + _bn_lrelu_ref(
            _conv2d_ref(y, params[f"blk{i}_w"], params[f"blk{i}_b"], pad, d),
            params[f"blk{i}_g"], params[f"blk{i}_be"])
    out = jnp.maximum(
        twice + _conv2d_ref(y, params["out_w"], params["out_b"], 1, 1), 0.0)
    return out[:, 0]


# ---------------------------------------------------------------------------
if __name__ == "__main__":
    key = jax.random.PRNGKey(0)
    keys = iter(jax.random.split(key, 40))

    N, H_LOW, W_LOW = 2, 8, 8          # low-res disparity
    H, W = 16, 16                      # RGB resolution (2x upsample -> *8 branch)
    IN_CH = 4                          # 1 disparity channel + 3 RGB channels
    FEAT = 32

    params = {
        "feat_w": 0.1 * jax.random.normal(next(keys), (FEAT, IN_CH, 3, 3), jnp.float32),
        "feat_b": 0.1 * jax.random.normal(next(keys), (FEAT,), jnp.float32),
        "feat_g": 0.5 + jax.random.uniform(next(keys), (FEAT,), jnp.float32),
        "feat_be": 0.1 * jax.random.normal(next(keys), (FEAT,), jnp.float32),
    }
    for i in range(len(ASTROUS_LIST)):
        params[f"blk{i}_w"] = 0.1 * jax.random.normal(next(keys), (FEAT, FEAT, 3, 3), jnp.float32)
        params[f"blk{i}_b"] = 0.1 * jax.random.normal(next(keys), (FEAT,), jnp.float32)
        params[f"blk{i}_g"] = 0.5 + jax.random.uniform(next(keys), (FEAT,), jnp.float32)
        params[f"blk{i}_be"] = 0.1 * jax.random.normal(next(keys), (FEAT,), jnp.float32)
    params["out_w"] = 0.1 * jax.random.normal(next(keys), (1, FEAT, 3, 3), jnp.float32)
    params["out_b"] = 0.1 * jax.random.normal(next(keys), (1,), jnp.float32)

    low_disp = jax.random.uniform(next(keys), (N, H_LOW, W_LOW), jnp.float32)
    rgb = jax.random.uniform(next(keys), (N, 3, H, W), jnp.float32)

    # tile_p=128 exercises a 4-step pipelined grid at this small demo size
    # (P = N*H*W = 512); with tile_p=None the auto-picker chooses wider tiles.
    fwd = jax.jit(functools.partial(edge_aware_refinement_forward, tile_p=128))
    out = jax.block_until_ready(fwd(low_disp, rgb, params))

    ref = reference_forward(low_disp, rgb, params)
    assert out.shape == (N, H, W)
    err = float(jnp.max(jnp.abs(out - ref)))
    assert jnp.allclose(out, ref, atol=2e-3, rtol=2e-3), f"max abs err = {err}"

    print("KERNEL_OK")
</pallas_src>

<mosaic_0001>
module attributes {stable_mosaic.version = 11 : i64} {
  func.func @_conv_stats_kernel(%arg0: i32, %arg1: memref<36x128xf32, #tpu.memory_space<vmem>>, %arg2: memref<32x36xf32, #tpu.memory_space<vmem>>, %arg3: memref<32x1xf32, #tpu.memory_space<vmem>>, %arg4: memref<32x128xf32, #tpu.memory_space<vmem>>, %arg5: memref<32x1xf32, #tpu.memory_space<vmem>>, %arg6: memref<32x1xf32, #tpu.memory_space<vmem>>) attributes {dimension_semantics = [#tpu.dimension_semantics<parallel>], iteration_bounds = array<i64: 4>, scalar_prefetch = 0 : i64, scratch_operands = 0 : i64, tpu.core_type = #tpu.core_type<tc>, window_params = [{transform_indices = @transform_0, window_bounds = array<i64: 36, 128>}, {pipeline_mode = #tpu.pipeline_mode<synchronous>, transform_indices = @transform_1, window_bounds = array<i64: 32, 36>}, {pipeline_mode = #tpu.pipeline_mode<synchronous>, transform_indices = @transform_2, window_bounds = array<i64: 32, 1>}, {transform_indices = @transform_3, window_bounds = array<i64: 32, 128>}, {transform_indices = @transform_4, window_bounds = array<i64: 32, 1>}, {transform_indices = @transform_5, window_bounds = array<i64: 32, 1>}]} {
    %c0 = arith.constant 0 : index
    %c0_0 = arith.constant 0 : index
    %0 = vector.load %arg2[%c0, %c0_0] : memref<32x36xf32, #tpu.memory_space<vmem>>, vector<32x36xf32>
    %c0_1 = arith.constant 0 : index
    %c0_2 = arith.constant 0 : index
    %1 = vector.load %arg1[%c0_1, %c0_2] : memref<36x128xf32, #tpu.memory_space<vmem>>, vector<36x128xf32>
    %cst = arith.constant dense<0.000000e+00> : vector<32x128xf32>
    %2 = tpu.matmul %0, %1, %cst {dimension_numbers = #tpu.dot_dimension_numbers<[1], [0], [0], [1], [0, 0, 1, 1], [], []>} : vector<32x36xf32>, vector<36x128xf32>, vector<32x128xf32> -> vector<32x128xf32>
    %c0_3 = arith.constant 0 : index
    %c0_4 = arith.constant 0 : index
    %3 = vector.load %arg3[%c0_3, %c0_4] : memref<32x1xf32, #tpu.memory_space<vmem>>, vector<32x1xf32>
    %4 = vector.broadcast %3 : vector<32x1xf32> to vector<32x128xf32>
    %5 = arith.addf %2, %4 : vector<32x128xf32>
    %c0_5 = arith.constant 0 : index
    %c0_6 = arith.constant 0 : index
    %6 = vector.load %arg4[%c0_5, %c0_6] : memref<32x128xf32, #tpu.memory_space<vmem>>, vector<32x128xf32>
    tpu.vector_store %arg4[%c0_5, %c0_6], %5 {strides = array<i32>} : memref<32x128xf32, #tpu.memory_space<vmem>>, vector<32x128xf32>,
    %cst_7 = arith.constant dense<0.000000e+00> : vector<32xf32>
    %7 = vector.multi_reduction <add>, %5, %cst_7 [1] : vector<32x128xf32> to vector<32xf32>
    %8 = vector.shape_cast %7 : vector<32xf32> to vector<32x1xf32>
    %c0_8 = arith.constant 0 : index
    %c0_9 = arith.constant 0 : index
    %9 = vector.load %arg5[%c0_8, %c0_9] : memref<32x1xf32, #tpu.memory_space<vmem>>, vector<32x1xf32>
    tpu.vector_store %arg5[%c0_8, %c0_9], %8 {strides = array<i32>} : memref<32x1xf32, #tpu.memory_space<vmem>>, vector<32x1xf32>,
    %10 = arith.mulf %5, %5 : vector<32x128xf32>
    %cst_10 = arith.constant dense<0.000000e+00> : vector<32xf32>
    %11 = vector.multi_reduction <add>, %10, %cst_10 [1] : vector<32x128xf32> to vector<32xf32>
    %12 = vector.shape_cast %11 : vector<32xf32> to vector<32x1xf32>
    %c0_11 = arith.constant 0 : index
    %c0_12 = arith.constant 0 : index
    %13 = vector.load %arg6[%c0_11, %c0_12] : memref<32x1xf32, #tpu.memory_space<vmem>>, vector<32x1xf32>
    tpu.vector_store %arg6[%c0_11, %c0_12], %12 {strides = array<i32>} : memref<32x1xf32, #tpu.memory_space<vmem>>, vector<32x1xf32>,
    return
  }
  func.func @transform_0(%arg0: i32) -> (i32, i32) {
    %c0_i32 = arith.constant 0 : i32
    %c0_i32_0 = arith.constant 0 : i32
    return %c0_i32, %arg0 : i32, i32
  }
  func.func @transform_1(%arg0: i32) -> (i32, i32) {
    %c0_i32 = arith.constant 0 : i32
    %c0_i32_0 = arith.constant 0 : i32
    %c0_i32_1 = arith.constant 0 : i32
    return %c0_i32, %c0_i32_0 : i32, i32
  }
  func.func @transform_2(%arg0: i32) -> (i32, i32) {
    %c0_i32 = arith.constant 0 : i32
    %c0_i32_0 = arith.constant 0 : i32
    %c0_i32_1 = arith.constant 0 : i32
    return %c0_i32, %c0_i32_0 : i32, i32
  }
  func.func @transform_3(%arg0: i32) -> (i32, i32) {
    %c0_i32 = arith.constant 0 : i32
    %c0_i32_0 = arith.constant 0 : i32
    return %c0_i32, %arg0 : i32, i32
  }
  func.func @transform_4(%arg0: i32) -> (i32, i32) {
    %c0_i32 = arith.constant 0 : i32
    %c0_i32_0 = arith.constant 0 : i32
    return %arg0, %c0_i32 : i32, i32
  }
  func.func @transform_5(%arg0: i32) -> (i32, i32) {
    %c0_i32 = arith.constant 0 : i32
    %c0_i32_0 = arith.constant 0 : i32
    return %arg0, %c0_i32 : i32, i32
  }
}

module attributes {stable_mosaic.version = 11 : i64} {
  func.func @_bn_lrelu_kernel(%arg0: i32, %arg1: memref<32x128xf32, #tpu.memory_space<vmem>>, %arg2: memref<32x1xf32, #tpu.memory_space<vmem>>, %arg3: memref<32x1xf32, #tpu.memory_space<vmem>>, %arg4: memref<32x128xf32, #tpu.memory_space<vmem>>) attributes {dimension_semantics = [#tpu.dimension_semantics<parallel>], iteration_bounds = array<i64: 4>, scalar_prefetch = 0 : i64, scratch_operands = 0 : i64, tpu.core_type = #tpu.core_type<tc>, window_params = [{transform_indices = @transform_0, window_bounds = array<i64: 32, 128>}, {pipeline_mode = #tpu.pipeline_mode<synchronous>, transform_indices = @transform_1, window_bounds = array<i64: 32, 1>}, {pipeline_mode = #tpu.pipeline_mode<synchronous>, transform_indices = @transform_2, window_bounds = array<i64: 32, 1>}, {transform_indices = @transform_3, window_bounds = array<i64: 32, 128>}]} {
    %c0 = arith.constant 0 : index
    %c0_0 = arith.constant 0 : index
    %0 = vector.load %arg1[%c0, %c0_0] : memref<32x128xf32, #tpu.memory_space<vmem>>, vector<32x128xf32>
    %c0_1 = arith.constant 0 : index
    %c0_2 = arith.constant 0 : index
    %1 = vector.load %arg2[%c0_1, %c0_2] : memref<32x1xf32, #tpu.memory_space<vmem>>, vector<32x1xf32>
    %2 = vector.broadcast %1 : vector<32x1xf32> to vector<32x128xf32>
    %3 = arith.mulf %0, %2 : vector<32x128xf32>
    %c0_3 = arith.constant 0 : index
    %c0_4 = arith.constant 0 : index
    %4 = vector.load %arg3[%c0_3, %c0_4] : memref<32x1xf32, #tpu.memory_space<vmem>>, vector<32x1xf32>
    %5 = vector.broadcast %4 : vector<32x1xf32> to vector<32x128xf32>
    %6 = arith.addf %3, %5 : vector<32x128xf32>
    %cst = arith.constant 0.000000e+00 : f32
    %7 = vector.broadcast %cst : f32 to vector<32x128xf32>
    %8 = arith.cmpf ogt, %6, %7 : vector<32x128xf32>
    %cst_5 = arith.constant 2.000000e-01 : f32
    %9 = vector.broadcast %cst_5 : f32 to vector<32x128xf32>
    %10 = arith.mulf %9, %6 : vector<32x128xf32>
    %11 = arith.select %8, %6, %10 : vector<32x128xi1>, vector<32x128xf32>
    %c0_6 = arith.constant 0 : index
    %c0_7 = arith.constant 0 : index
    %12 = vector.load %arg4[%c0_6, %c0_7] : memref<32x128xf32, #tpu.memory_space<vmem>>, vector<32x128xf32>
    tpu.vector_store %arg4[%c0_6, %c0_7], %11 {strides = array<i32>} : memref<32x128xf32, #tpu.memory_space<vmem>>, vector<32x128xf32>,
    return
  }
  func.func @transform_0(%arg0: i32) -> (i32, i32) {
    %c0_i32 = arith.constant 0 : i32
    %c0_i32_0 = arith.constant 0 : i32
    return %c0_i32, %arg0 : i32, i32
  }
  func.func @transform_1(%arg0: i32) -> (i32, i32) {
    %c0_i32 = arith.constant 0 : i32
    %c0_i32_0 = arith.constant 0 : i32
    %c0_i32_1 = arith.constant 0 : i32
    return %c0_i32, %c0_i32_0 : i32, i32
  }
  func.func @transform_2(%arg0: i32) -> (i32, i32) {
    %c0_i32 = arith.constant 0 : i32
    %c0_i32_0 = arith.constant 0 : i32
    %c0_i32_1 = arith.constant 0 : i32
    return %c0_i32, %c0_i32_0 : i32, i32
  }
  func.func @transform_3(%arg0: i32) -> (i32, i32) {
    %c0_i32 = arith.constant 0 : i32
    %c0_i32_0 = arith.constant 0 : i32
    return %c0_i32, %arg0 : i32, i32
  }
}

module attributes {stable_mosaic.version = 11 : i64} {
  func.func @_bn_lrelu_res_kernel(%arg0: i32, %arg1: memref<32x128xf32, #tpu.memory_space<vmem>>, %arg2: memref<32x1xf32, #tpu.memory_space<vmem>>, %arg3: memref<32x1xf32, #tpu.memory_space<vmem>>, %arg4: memref<32x128xf32, #tpu.memory_space<vmem>>, %arg5: memref<32x128xf32, #tpu.memory_space<vmem>>) attributes {dimension_semantics = [#tpu.dimension_semantics<parallel>], iteration_bounds = array<i64: 4>, scalar_prefetch = 0 : i64, scratch_operands = 0 : i64, tpu.core_type = #tpu.core_type<tc>, window_params = [{transform_indices = @transform_0, window_bounds = array<i64: 32, 128>}, {pipeline_mode = #tpu.pipeline_mode<synchronous>, transform_indices = @transform_1, window_bounds = array<i64: 32, 1>}, {pipeline_mode = #tpu.pipeline_mode<synchronous>, transform_indices = @transform_2, window_bounds = array<i64: 32, 1>}, {transform_indices = @transform_3, window_bounds = array<i64: 32, 128>}, {transform_indices = @transform_4, window_bounds = array<i64: 32, 128>}]} {
    %c0 = arith.constant 0 : index
    %c0_0 = arith.constant 0 : index
    %0 = vector.load %arg1[%c0, %c0_0] : memref<32x128xf32, #tpu.memory_space<vmem>>, vector<32x128xf32>
    %c0_1 = arith.constant 0 : index
    %c0_2 = arith.constant 0 : index
    %1 = vector.load %arg2[%c0_1, %c0_2] : memref<32x1xf32, #tpu.memory_space<vmem>>, vector<32x1xf32>
    %2 = vector.broadcast %1 : vector<32x1xf32> to vector<32x128xf32>
    %3 = arith.mulf %0, %2 : vector<32x128xf32>
    %c0_3 = arith.constant 0 : index
    %c0_4 = arith.constant 0 : index
    %4 = vector.load %arg3[%c0_3, %c0_4] : memref<32x1xf32, #tpu.memory_space<vmem>>, vector<32x1xf32>
    %5 = vector.broadcast %4 : vector<32x1xf32> to vector<32x128xf32>
    %6 = arith.addf %3, %5 : vector<32x128xf32>
    %cst = arith.constant 0.000000e+00 : f32
    %7 = vector.broadcast %cst : f32 to vector<32x128xf32>
    %8 = arith.cmpf ogt, %6, %7 : vector<32x128xf32>
    %cst_5 = arith.constant 2.000000e-01 : f32
    %9 = vector.broadcast %cst_5 : f32 to vector<32x128xf32>
    %10 = arith.mulf %9, %6 : vector<32x128xf32>
    %11 = arith.select %8, %6, %10 : vector<32x128xi1>, vector<32x128xf32>
    %c0_6 = arith.constant 0 : index
    %c0_7 = arith.constant 0 : index
    %12 = vector.load %arg4[%c0_6, %c0_7] : memref<32x128xf32, #tpu.memory_space<vmem>>, vector<32x128xf32>
    %13 = arith.addf %11, %12 : vector<32x128xf32>
    %c0_8 = arith.constant 0 : index
    %c0_9 = arith.constant 0 : index
    %14 = vector.load %arg5[%c0_8, %c0_9] : memref<32x128xf32, #tpu.memory_space<vmem>>, vector<32x128xf32>
    tpu.vector_store %arg5[%c0_8, %c0_9], %13 {strides = array<i32>} : memref<32x128xf32, #tpu.memory_space<vmem>>, vector<32x128xf32>,
    return
  }
  func.func @transform_0(%arg0: i32) -> (i32, i32) {
    %c0_i32 = arith.constant 0 : i32
    %c0_i32_0 = arith.constant 0 : i32
    return %c0_i32, %arg0 : i32, i32
  }
  func.func @transform_1(%arg0: i32) -> (i32, i32) {
    %c0_i32 = arith.constant 0 : i32
    %c0_i32_0 = arith.constant 0 : i32
    %c0_i32_1 = arith.constant 0 : i32
    return %c0_i32, %c0_i32_0 : i32, i32
  }
  func.func @transform_2(%arg0: i32) -> (i32, i32) {
    %c0_i32 = arith.constant 0 : i32
    %c0_i32_0 = arith.constant 0 : i32
    %c0_i32_1 = arith.constant 0 : i32
    return %c0_i32, %c0_i32_0 : i32, i32
  }
  func.func @transform_3(%arg0: i32) -> (i32, i32) {
    %c0_i32 = arith.constant 0 : i32
    %c0_i32_0 = arith.constant 0 : i32
    return %c0_i32, %arg0 : i32, i32
  }
  func.func @transform_4(%arg0: i32) -> (i32, i32) {
    %c0_i32 = arith.constant 0 : i32
    %c0_i32_0 = arith.constant 0 : i32
    return %c0_i32, %arg0 : i32, i32
  }
}

module attributes {stable_mosaic.version = 11 : i64} {
  func.func @_conv_stats_kernel(%arg0: i32, %arg1: memref<288x128xf32, #tpu.memory_space<vmem>>, %arg2: memref<32x288xf32, #tpu.memory_space<vmem>>, %arg3: memref<32x1xf32, #tpu.memory_space<vmem>>, %arg4: memref<32x128xf32, #tpu.memory_space<vmem>>, %arg5: memref<32x1xf32, #tpu.memory_space<vmem>>, %arg6: memref<32x1xf32, #tpu.memory_space<vmem>>) attributes {dimension_semantics = [#tpu.dimension_semantics<parallel>], iteration_bounds = array<i64: 4>, scalar_prefetch = 0 : i64, scratch_operands = 0 : i64, tpu.core_type = #tpu.core_type<tc>, window_params = [{transform_indices = @transform_0, window_bounds = array<i64: 288, 128>}, {pipeline_mode = #tpu.pipeline_mode<synchronous>, transform_indices = @transform_1, window_bounds = array<i64: 32, 288>}, {pipeline_mode = #tpu.pipeline_mode<synchronous>, transform_indices = @transform_2, window_bounds = array<i64: 32, 1>}, {transform_indices = @transform_3, window_bounds = array<i64: 32, 128>}, {transform_indices = @transform_4, window_bounds = array<i64: 32, 1>}, {transform_indices = @transform_5, window_bounds = array<i64: 32, 1>}]} {
    %c0 = arith.constant 0 : index
    %c0_0 = arith.constant 0 : index
    %0 = vector.load %arg2[%c0, %c0_0] : memref<32x288xf32, #tpu.memory_space<vmem>>, vector<32x288xf32>
    %c0_1 = arith.constant 0 : index
    %c0_2 = arith.constant 0 : index
    %1 = vector.load %arg1[%c0_1, %c0_2] : memref<288x128xf32, #tpu.memory_space<vmem>>, vector<288x128xf32>
    %cst = arith.constant dense<0.000000e+00> : vector<32x128xf32>
    %2 = tpu.matmul %0, %1, %cst {dimension_numbers = #tpu.dot_dimension_numbers<[1], [0], [0], [1], [0, 0, 1, 1], [], []>} : vector<32x288xf32>, vector<288x128xf32>, vector<32x128xf32> -> vector<32x128xf32>
    %c0_3 = arith.constant 0 : index
    %c0_4 = arith.constant 0 : index
    %3 = vector.load %arg3[%c0_3, %c0_4] : memref<32x1xf32, #tpu.memory_space<vmem>>, vector<32x1xf32>
    %4 = vector.broadcast %3 : vector<32x1xf32> to vector<32x128xf32>
    %5 = arith.addf %2, %4 : vector<32x128xf32>
    %c0_5 = arith.constant 0 : index
    %c0_6 = arith.constant 0 : index
    %6 = vector.load %arg4[%c0_5, %c0_6] : memref<32x128xf32, #tpu.memory_space<vmem>>, vector<32x128xf32>
    tpu.vector_store %arg4[%c0_5, %c0_6], %5 {strides = array<i32>} : memref<32x128xf32, #tpu.memory_space<vmem>>, vector<32x128xf32>,
    %cst_7 = arith.constant dense<0.000000e+00> : vector<32xf32>
    %7 = vector.multi_reduction <add>, %5, %cst_7 [1] : vector<32x128xf32> to vector<32xf32>
    %8 = vector.shape_cast %7 : vector<32xf32> to vector<32x1xf32>
    %c0_8 = arith.constant 0 : index
    %c0_9 = arith.constant 0 : index
    %9 = vector.load %arg5[%c0_8, %c0_9] : memref<32x1xf32, #tpu.memory_space<vmem>>, vector<32x1xf32>
    tpu.vector_store %arg5[%c0_8, %c0_9], %8 {strides = array<i32>} : memref<32x1xf32, #tpu.memory_space<vmem>>, vector<32x1xf32>,
    %10 = arith.mulf %5, %5 : vector<32x128xf32>
    %cst_10 = arith.constant dense<0.000000e+00> : vector<32xf32>
    %11 = vector.multi_reduction <add>, %10, %cst_10 [1] : vector<32x128xf32> to vector<32xf32>
    %12 = vector.shape_cast %11 : vector<32xf32> to vector<32x1xf32>
    %c0_11 = arith.constant 0 : index
    %c0_12 = arith.constant 0 : index
    %13 = vector.load %arg6[%c0_11, %c0_12] : memref<32x1xf32, #tpu.memory_space<vmem>>, vector<32x1xf32>
    tpu.vector_store %arg6[%c0_11, %c0_12], %12 {strides = array<i32>} : memref<32x1xf32, #tpu.memory_space<vmem>>, vector<32x1xf32>,
    return
  }
  func.func @transform_0(%arg0: i32) -> (i32, i32) {
    %c0_i32 = arith.constant 0 : i32
    %c0_i32_0 = arith.constant 0 : i32
    return %c0_i32, %arg0 : i32, i32
  }
  func.func @transform_1(%arg0: i32) -> (i32, i32) {
    %c0_i32 = arith.constant 0 : i32
    %c0_i32_0 = arith.constant 0 : i32
    %c0_i32_1 = arith.constant 0 : i32
    return %c0_i32, %c0_i32_0 : i32, i32
  }
  func.func @transform_2(%arg0: i32) -> (i32, i32) {
    %c0_i32 = arith.constant 0 : i32
    %c0_i32_0 = arith.constant 0 : i32
    %c0_i32_1 = arith.constant 0 : i32
    return %c0_i32, %c0_i32_0 : i32, i32
  }
  func.func @transform_3(%arg0: i32) -> (i32, i32) {
    %c0_i32 = arith.constant 0 : i32
    %c0_i32_0 = arith.constant 0 : i32
    return %c0_i32, %arg0 : i32, i32
  }
  func.func @transform_4(%arg0: i32) -> (i32, i32) {
    %c0_i32 = arith.constant 0 : i32
    %c0_i32_0 = arith.constant 0 : i32
    return %arg0, %c0_i32 : i32, i32
  }
  func.func @transform_5(%arg0: i32) -> (i32, i32) {
    %c0_i32 = arith.constant 0 : i32
    %c0_i32_0 = arith.constant 0 : i32
    return %arg0, %c0_i32 : i32, i32
  }
}

module attributes {stable_mosaic.version = 11 : i64} {
  func.func @_out_conv_kernel(%arg0: i32, %arg1: memref<288x128xf32, #tpu.memory_space<vmem>>, %arg2: memref<1x128xf32, #tpu.memory_space<vmem>>, %arg3: memref<288x1xf32, #tpu.memory_space<vmem>>, %arg4: memref<1x1xf32, #tpu.memory_space<vmem>>, %arg5: memref<1x128xf32, #tpu.memory_space<vmem>>) attributes {dimension_semantics = [#tpu.dimension_semantics<parallel>], iteration_bounds = array<i64: 4>, scalar_prefetch = 0 : i64, scratch_operands = 0 : i64, tpu.core_type = #tpu.core_type<tc>, window_params = [{transform_indices = @transform_0, window_bounds = array<i64: 288, 128>}, {transform_indices = @transform_1, window_bounds = array<i64: 1, 128>}, {pipeline_mode = #tpu.pipeline_mode<synchronous>, transform_indices = @transform_2, window_bounds = array<i64: 288, 1>}, {pipeline_mode = #tpu.pipeline_mode<synchronous>, transform_indices = @transform_3, window_bounds = array<i64: 1, 1>}, {transform_indices = @transform_4, window_bounds = array<i64: 1, 128>}]} {
    %c0 = arith.constant 0 : index
    %c0_0 = arith.constant 0 : index
    %0 = vector.load %arg1[%c0, %c0_0] : memref<288x128xf32, #tpu.memory_space<vmem>>, vector<288x128xf32>
    %c0_1 = arith.constant 0 : index
    %c0_2 = arith.constant 0 : index
    %1 = vector.load %arg3[%c0_1, %c0_2] : memref<288x1xf32, #tpu.memory_space<vmem>>, vector<288x1xf32>
    %2 = vector.broadcast %1 : vector<288x1xf32> to vector<288x128xf32>
    %3 = arith.mulf %0, %2 : vector<288x128xf32>
    %cst = arith.constant dense<0.000000e+00> : vector<128xf32>
    %4 = vector.multi_reduction <add>, %3, %cst [0] : vector<288x128xf32> to vector<128xf32>
    %5 = vector.shape_cast %4 : vector<128xf32> to vector<1x128xf32>
    %c0_3 = arith.constant 0 : index
    %c0_4 = arith.constant 0 : index
    %6 = vector.load %arg4[%c0_3, %c0_4] : memref<1x1xf32, #tpu.memory_space<vmem>>, vector<1x1xf32>
    %7 = vector.broadcast %6 : vector<1x1xf32> to vector<1x128xf32>
    %8 = arith.addf %5, %7 : vector<1x128xf32>
    %c0_5 = arith.constant 0 : index
    %c0_6 = arith.constant 0 : index
    %9 = vector.load %arg2[%c0_5, %c0_6] : memref<1x128xf32, #tpu.memory_space<vmem>>, vector<1x128xf32>
    %10 = arith.addf %8, %9 : vector<1x128xf32>
    %cst_7 = arith.constant 0.000000e+00 : f32
    %11 = vector.broadcast %cst_7 : f32 to vector<1x128xf32>
    %12 = arith.maximumf %10, %11 : vector<1x128xf32>
    %c0_8 = arith.constant 0 : index
    %c0_9 = arith.constant 0 : index
    %13 = vector.load %arg5[%c0_8, %c0_9] : memref<1x128xf32, #tpu.memory_space<vmem>>, vector<1x128xf32>
    tpu.vector_store %arg5[%c0_8, %c0_9], %12 {strides = array<i32>} : memref<1x128xf32, #tpu.memory_space<vmem>>, vector<1x128xf32>,
    return
  }
  func.func @transform_0(%arg0: i32) -> (i32, i32) {
    %c0_i32 = arith.constant 0 : i32
    %c0_i32_0 = arith.constant 0 : i32
    return %c0_i32, %arg0 : i32, i32
  }
  func.func @transform_1(%arg0: i32) -> (i32, i32) {
    %c0_i32 = arith.constant 0 : i32
    %c0_i32_0 = arith.constant 0 : i32
    return %c0_i32, %arg0 : i32, i32
  }
  func.func @transform_2(%arg0: i32) -> (i32, i32) {
    %c0_i32 = arith.constant 0 : i32
    %c0_i32_0 = arith.constant 0 : i32
    %c0_i32_1 = arith.constant 0 : i32
    return %c0_i32, %c0_i32_0 : i32, i32
  }
  func.func @transform_3(%arg0: i32) -> (i32, i32) {
    %c0_i32 = arith.constant 0 : i32
    %c0_i32_0 = arith.constant 0 : i32
    %c0_i32_1 = arith.constant 0 : i32
    return %c0_i32, %c0_i32_0 : i32, i32
  }
  func.func @transform_4(%arg0: i32) -> (i32, i32) {
    %c0_i32 = arith.constant 0 : i32
    %c0_i32_0 = arith.constant 0 : i32
    return %c0_i32, %arg0 : i32, i32
  }
}

</mosaic_0001>

<bundles_post_ra>
// kernel: edge_aware_refinement_forward.16
= control target key start
LH: loop header
LB: loop body
LE: loop exit
PB: predicated region body
PF: predicated region fallthrough
CT: control target
= control target key end

     0   :  { %s483_s12 = smov 0   ;;  %s485_s13 = smov 0   ;;  %s567_s0 = inlined_call_operand.vmem [shape: f32[32,512], index: 0, kind: input, shape index: {}]   ;;  %s568_s1 = inlined_call_operand.vmem [shape: f32[32,1], index: 1, kind: input, shape index: {}]   ;;  %s569_s2 = inlined_call_operand.vmem [shape: f32[32,1], index: 2, kind: input, shape index: {}]   ;;  %s570_s3 = inlined_call_operand.vmem [shape: f32[32,512], index: 3, kind: output, shape index: {}]  }
   0x1   :  { %s487_s14 = smov 0  }
   0x2 LB: > { %s398_s15 = sadd.s32 4294967295, %s460_s14   ;;  %s500_s16 = sadd.s32 1, %s460_s14   ;;  %s460_s14 = sphi %s487_s14, %s574_s14   ;;  %s456_s13 = sphi %s485_s13, %s573_s13   ;;  %s452_s12 = sphi %s483_s12, %s572_s12  }
   0x3   : > { %s17_s17 = ssub.s32 %s460_s14, %s500_s16  ;;  %s20_s18 = sadd.s32 1, %s456_s13 }
   0x4   : > { %p18_p0 = scmp.eq.s32.totalorder %s17_s17, 0  ;;  %p27_p1 = scmp.ne.s32.totalorder %s456_s13, %s452_s12 }
   0x5   : > { %p28_p2 = scmp.eq.s32.totalorder %s460_s14, 0  ;;  %p99_p3 = scmp.eq.s32.totalorder %s398_s15, 3 }
   0x6   : > { %s511_s19 = scalar_select %p18_p0, %s456_s13, %s20_s18  }
   0x7   : > { %p29_p4 = por %p28_p2, %p27_p1  ;;  %p513_p5 = por %p99_p3, %p27_p1 }
   0x8   : > { %p401_p6 = scmp.ge.s32.totalorder %s460_s14, 4 }
   0xa   : > { %127 = sbr.rel (%p401_p6) target bundleno = 23 (0x17), region = 24 }
   0xf   : > { %130 = sbr.rel (!%p29_p4) target bundleno = 23 (0x17), region = 28  ;;  %s132_s21 = sand.u32 (%p29_p4), 1, %s456_s13  }
  0x10   : > { %s403_s22 = sshll.u32 (%p29_p4), %s460_s14, 3  ;;  %s402_s23 = sshll.u32 (%p29_p4), %s132_s21, 5 }
  0x11   : > { %s136_s26 = scalar_lea.vmem (%p29_p4), %s567_s0, %s403_s22  ;;  %s134_s27 = scalar_lea.vmem (%p29_p4), [#allocation2], %s402_s23 }
  0x12   : > { %v171_v0 = vld [vmem:[%s136_s26] sm:$0xff] (%p29_p4) }
  0x13   : > { %v173_v1 = vld [vmem:[%s136_s26 + $0x20] sm:$0xff] (%p29_p4)  ;;  %172 = vst [vmem:[%s134_s27] sm:$0xff] (%p29_p4), %v171_v0 }
  0x14   : > { %v175_v2 = vld [vmem:[%s136_s26 + $0x40] sm:$0xff]  ;;  %174 = vst [vmem:[%s134_s27 + $0x8] sm:$0xff] %v173_v1 }
  0x15   : > { %176 = vst [vmem:[%s134_s27 + $0x10] sm:$0xff] %v175_v2  ;;  %v177_v3 = vld [vmem:[%s136_s26 + $0x60] sm:$0xff] }
  0x16   : > { %178 = vst [vmem:[%s134_s27 + $0x18] sm:$0xff] %v177_v3 }
  0x17 PF: > { %p404_p7 = scmp.ge.s32.totalorder %s460_s14, 1  ;;  %p183_p8 = scmp.lt.s32.totalorder %s460_s14, 5 }
  0x19   : > { %p184_p9 = pnand %p404_p7, %p183_p8 }
  0x1a   : > { %s190_s24 = sand.u32 (!%p184_p9), 1, %s452_s12  }
  0x1b   : > { %187 = sbr.rel (%p184_p9) target bundleno = 184 (0xb8), region = 66  ;;  %s405_s25 = sshll.u32 (!%p184_p9), %s190_s24, 5 }
  0x1c   : > { %s192_s26 = scalar_lea.vmem (!%p184_p9), [#allocation2], %s405_s25  ;;  %s211_s12 = scalar_lea.vmem (!%p184_p9), [#allocation3], %s405_s25 }
  0x20   : > { %v218_v4 = vld [vmem:[%s568_s1 + $0x10] sm:$0xff]  ;;  %v216_v5 = vld [vmem:[%s568_s1] sm:$0xff]  ;;  %v462_v6 = vmov 0   ;;  %v219_v7 = vld [vmem:[%s568_s1 + $0x18] sm:$0xff]  ;;  %s408_s27 = sshll.u32 (%p513_p5), %s398_s15, 3 }
  0x21   : > { %437 = vset.pattern.permute.xlu1 %v462_v6  ;;  %436 = vset.pattern.permute.xlu0 %v462_v6  ;;  %v217_v8 = vld [vmem:[%s568_s1 + $0x8] sm:$0xff]  ;;  %v244_v10 = vld [vmem:[%s569_s2] sm:$0xff]  ;;  %v247_v11 = vld [vmem:[%s569_s2 + $0x18] sm:$0xff]  ;;  %s296_s30 = scalar_lea.vmem (%p513_p5), %s570_s3, %s408_s27 }
  0x22   : > { %232 = vperm.xlu1 %437, %v218_v4   ;;  %222 = vperm.xlu0 %436, %v216_v5   ;;  %v245_v9 = vld [vmem:[%s569_s2 + $0x8] sm:$0xff]  ;;  %v246_v12 = vld [vmem:[%s569_s2 + $0x10] sm:$0xff]  ;;  %v212_v15 = vld [vmem:[%s192_s26] sm:$0xff] }
  0x23   : > { %v213_v18 = vld [vmem:[%s192_s26 + $0x8] sm:$0xff]  ;;  %v214_v19 = vld [vmem:[%s192_s26 + $0x10] sm:$0xff]  ;;  %v215_v21 = vld [vmem:[%s192_s26 + $0x18] sm:$0xff] }
  0x26   : > { %237 = vperm.xlu1 %437, %v219_v7   ;;  %227 = vperm.xlu0 %436, %v217_v8  }
  0x2a   : > { %255 = vperm.xlu1 %437, %v245_v9   ;;  %250 = vperm.xlu0 %436, %v244_v10  }
  0x2e   : > { %265 = vperm.xlu1 %437, %v247_v11   ;;  %260 = vperm.xlu0 %436, %v246_v12  }
  0x9d   : > { %v233_v13 = vpop.permute.xlu1 %232  ;;  %v223_v14 = vpop.permute.xlu0 %222 }
  0x9e   : > { %v240_v20 = vmul.f32 %v223_v14, %v212_v15  ;;  %v242_v27 = vmul.f32 %v233_v13, %v214_v19 }
  0xa1   : > { %v238_v16 = vpop.permute.xlu1 %237  ;;  %v228_v17 = vpop.permute.xlu0 %227 }
  0xa2   : > { %v241_v22 = vmul.f32 %v228_v17, %v213_v18  ;;  %v243_v28 = vmul.f32 %v238_v16, %v215_v21 }
  0xa5   : > { %v256_v23 = vpop.permute.xlu1 %255  ;;  %v251_v24 = vpop.permute.xlu0 %250 }
  0xa6   : > { %v269_v25 = vadd.f32 %v256_v23, %v241_v22  ;;  %v268_v26 = vadd.f32 %v251_v24, %v240_v20 }
  0xa8   : > { %vm273_vm0 = vcmp.gt.f32.partialorder %v269_v25, 0.0  ;;  %v277_v29 = vmul.f32 0.2, %v269_v25  ;;  %vm272_vm1 = vcmp.gt.f32.partialorder %v268_v26, 0.0  ;;  %v276_v30 = vmul.f32 0.2, %v268_v26 }
  0xa9   : > { %v266_v31 = vpop.permute.xlu1 %265  ;;  %v261_v32 = vpop.permute.xlu0 %260 }
  0xaa   : > { %v281_v33 = vsel %vm273_vm0, %v269_v25, %v277_v29  ;;  %v280_v34 = vsel %vm272_vm1, %v268_v26, %v276_v30  ;;  %v271_v35 = vadd.f32 %v266_v31, %v243_v28  ;;  %v270_v36 = vadd.f32 %v261_v32, %v242_v27 }
  0xab   : > { %285 = vst [vmem:[%s211_s12 + $0x8] sm:$0xff] %v281_v33  ;;  %284 = vst [vmem:[%s211_s12] sm:$0xff] %v280_v34  ;;  %294 = sbr.rel (!%p513_p5) target bundleno = 184 (0xb8), region = 74 }
  0xac   : > { %vm275_vm2 = vcmp.gt.f32.partialorder %v271_v35, 0.0  ;;  %v279_v37 = vmul.f32 0.2, %v271_v35  ;;  %vm274_vm3 = vcmp.gt.f32.partialorder %v270_v36, 0.0  ;;  %v278_v38 = vmul.f32 0.2, %v270_v36 }
  0xae   : > { %v283_v39 = vsel %vm275_vm2, %v271_v35, %v279_v37  ;;  %v282_v40 = vsel %vm274_vm3, %v270_v36, %v278_v38 }
  0xaf   : > { %287 = vst [vmem:[%s211_s12 + $0x18] sm:$0xff] %v283_v39  ;;  %286 = vst [vmem:[%s211_s12 + $0x10] sm:$0xff] %v282_v40 }
  0xb2   : > { %v331_v41 = vld [vmem:[%s211_s12] sm:$0xff]  ;;  %v333_v42 = vld [vmem:[%s211_s12 + $0x8] sm:$0xff] }
  0xb3   : > { %332 = vst [vmem:[%s296_s30] sm:$0xff] %v331_v41  ;;  %334 = vst [vmem:[%s296_s30 + $0x20] sm:$0xff] %v333_v42 }
  0xb6   : > { %v335_v43 = vld [vmem:[%s211_s12 + $0x10] sm:$0xff]  ;;  %v337_v44 = vld [vmem:[%s211_s12 + $0x18] sm:$0xff] }
  0xb7   : > { %336 = vst [vmem:[%s296_s30 + $0x40] sm:$0xff] %v335_v43  ;;  %338 = vst [vmem:[%s296_s30 + $0x60] sm:$0xff] %v337_v44 }
  0xb8 PF: > { %p10_p10 = scmp.ge.s32.totalorder %s500_s16, 6   ;;  %s572_s12 = smov %s456_s13 }
  0xb9   : > { %s573_s13 = smov %s511_s19  ;;  %s574_s14 = smov %s500_s16 }
  0xba   :  { %12 = sbr.rel (!%p10_p10) target bundleno = 2 (0x2), region = 143 }

// kernel: edge_aware_refinement_forward.15
= control target key start
LH: loop header
LB: loop body
LE: loop exit
PB: predicated region body
PF: predicated region fallthrough
CT: control target
= control target key end

     0   :  { %s782_s18 = smov 0   ;;  %s784_s19 = smov 0   ;;  %s899_s0 = inlined_call_operand.vmem [shape: f32[36,512], index: 0, kind: input, shape index: {}]   ;;  %s900_s1 = inlined_call_operand.vmem [shape: f32[32,36], index: 1, kind: input, shape index: {}]   ;;  %s901_s2 = inlined_call_operand.vmem [shape: f32[32,1], index: 2, kind: input, shape index: {}]   ;;  %s902_s3 = inlined_call_operand.vmem [shape: f32[32,512], index: 3, kind: output, shape index: {0}]   ;;  %s903_s4 = inlined_call_operand.vmem [shape: f32[128,1], index: 4, kind: output, shape index: {1}]   ;;  %s904_s5 = inlined_call_operand.vmem [shape: f32[128,1], index: 5, kind: output, shape index: {2}]  }
   0x1   :  { %s786_s20 = smov 0  }
   0x2 LB: > { %s798_s21 = sadd.s32 4294967295, %s749_s20   ;;  %s801_s22 = sadd.s32 1, %s749_s20   ;;  %s749_s20 = sphi %s786_s20, %s908_s20   ;;  %s745_s19 = sphi %s784_s19, %s907_s19   ;;  %s741_s18 = sphi %s782_s18, %s906_s18  }
   0x3   : > { %s20_s23 = ssub.s32 %s749_s20, %s801_s22  ;;  %s23_s24 = sadd.s32 1, %s745_s19 }
   0x4   : > { %p21_p0 = scmp.eq.s32.totalorder %s20_s23, 0  ;;  %p30_p1 = scmp.ne.s32.totalorder %s745_s19, %s741_s18 }
   0x5   : > { %p31_p2 = scmp.eq.s32.totalorder %s749_s20, 0  ;;  %p102_p3 = scmp.eq.s32.totalorder %s798_s21, 3 }
   0x6   : > { %s811_s25 = scalar_select %p21_p0, %s745_s19, %s23_s24  }
   0x7   : > { %p32_p4 = por %p31_p2, %p30_p1  ;;  %p813_p5 = por %p102_p3, %p30_p1 }
   0x8   : > { %p646_p6 = scmp.ge.s32.totalorder %s749_s20, 4 }
   0xa   : > { %182 = sbr.rel (%p646_p6) target bundleno = 24 (0x18), region = 24 }
   0xf   : > { %185 = sbr.rel (!%p32_p4) target bundleno = 24 (0x18), region = 28  ;;  %s187_s27 = sand.u32 (%p32_p4), 1, %s745_s19  }
  0x10   : > { %s647_s28 = sshll.u32 (%p32_p4), %s749_s20, 3  ;;  %s698_s29 = smul.u32 (%p32_p4), 40, %s187_s27 }
  0x11   : > { %s191_s7 = scalar_lea.vmem (%p32_p4), %s899_s0, %s647_s28 }
  0x12   : > { %v228_v0 = vld [vmem:[%s191_s7] sm:$0xff] (%p32_p4)  ;;  %s189_s8 = scalar_lea.vmem (%p32_p4), [#allocation2], %s698_s29 }
  0x13   : > { %v230_v1 = vld [vmem:[%s191_s7 + $0x20] sm:$0xff] (%p32_p4)  ;;  %229 = vst [vmem:[%s189_s8] sm:$0xff] (%p32_p4), %v228_v0 }
  0x14   : > { %v232_v2 = vld [vmem:[%s191_s7 + $0x40] sm:$0xff]  ;;  %231 = vst [vmem:[%s189_s8 + $0x8] sm:$0xff] %v230_v1 }
  0x15   : > { %v234_v3 = vld [vmem:[%s191_s7 + $0x60] sm:$0xff]  ;;  %233 = vst [vmem:[%s189_s8 + $0x10] sm:$0xff] %v232_v2 }
  0x16   : > { %v236_v4 = vld [vmem:[%s191_s7 + $0x80] sm:$0xff]  ;;  %235 = vst [vmem:[%s189_s8 + $0x18] sm:$0xff] %v234_v3 }
  0x17   : > { %237 = vst [vmem:[%s189_s8 + $0x20] sm:$0xff] %v236_v4 }
  0x18 PF: > { %p648_p7 = scmp.ge.s32.totalorder %s749_s20, 1  ;;  %p242_p8 = scmp.lt.s32.totalorder %s749_s20, 5 }
  0x1a   : > { %p243_p9 = pnand %p648_p7, %p242_p8 }
  0x1b   : > { %s249_s9 = sand.u32 (!%p243_p9), 1, %s741_s18   ;;  %s650_s18 = sshll.u32 (!%p243_p9), %s798_s21, 2 }
  0x1c   : > { %246 = sbr.rel (%p243_p9) target bundleno = 397 (0x18d), region = 66  ;;  %s649_s10 = sshll.u32 (!%p243_p9), %s249_s9, 5 }
  0x1d   : > { %s699_s14 = smul.u32 (!%p243_p9), 40, %s249_s9  ;;  %s858_s11 = scalar_lea.vmem (!%p243_p9), [#allocation3], %s649_s10 }
  0x1e   : > { %p286_p10 = scmp.lt.s32.totalorder (!%p243_p9), %s650_s18, 15 }
  0x1f   : > { %s251_s23 = scalar_lea.vmem (!%p243_p9), [#allocation2], %s699_s14 }
  0x21   : > { %v297_v5 = vld [vmem:[%s900_s1] sm:$0xff]  ;;  %vm330_vm0 = vcmask 293888   ;;  %v299_v6 = vld [vmem:[%s900_s1 + $0x10] sm:$0xff]  ;;  %vm343_vm1 = vcmask 1043456   ;;  %v751_v8 = vmov 0   ;;  %v298_v15 = vld [vmem:[%s900_s1 + $0x8] sm:$0xff] }
  0x22   : > { %682 = vmatprep.mubr.msk.f32.mxu0 %vm330_vm0, %v297_v5  ;;  %685 = vmatprep.mubr.msk.f32.mxu1 %vm330_vm0, %v299_v6  ;;  %v308_v7 = vld [vmem:[%s901_s2 + $0x10] sm:$0xff]  ;;  %v306_v9 = vld [vmem:[%s901_s2] sm:$0xff]  ;;  %v300_v16 = vld [vmem:[%s900_s1 + $0x18] sm:$0xff]  ;;  %s910_s18 = smov (!%p286_p10, %s650_s18), 15  ;;  %vm444_vm2 = vcmask 7168   ;;  %s660_s20 = sshll.u32 (%p813_p5), %s798_s21, 3 }
  0x23   : > { %726 = vset.pattern.permute.xlu1 %v751_v8  ;;  %725 = vset.pattern.permute.xlu0 %v751_v8  ;;  %v305_v10 = vld [vmem:[%s251_s23 + $0x20] sm:$0xf]  ;;  %v304_v11 = vld [vmem:[%s251_s23 + $0x18] sm:$0xff]  ;;  %v303_v12 = vld [vmem:[%s251_s23 + $0x10] sm:$0xff]  ;;  %s651_s9 = sshll.u32 %s910_s18, 3  ;;  %s483_s27 = scalar_lea.vmem (%p813_p5), %s902_s3, %s660_s20 }
  0x24   : > { %322 = vperm.xlu1 %726, %v308_v7   ;;  %312 = vperm.xlu0 %725, %v306_v9   ;;  %v302_v13 = vld [vmem:[%s251_s23 + $0x8] sm:$0xff]  ;;  %v301_v14 = vld [vmem:[%s251_s23] sm:$0xff]  ;;  %v309_v17 = vld [vmem:[%s901_s2 + $0x18] sm:$0xff]  ;;  %s289_s14 = scalar_lea.vmem %s903_s4, %s651_s9  ;;  %s295_s17 = scalar_lea.vmem %s904_s5, %s651_s9 }
  0x25   : > { %672 = vmatprep.subr.msk.mxu0 %vm343_vm1, %v305_v10  ;;  %688 = vmatprep.subr.msk.mxu1 %vm343_vm1, %v305_v10  ;;  %v307_v18 = vld [vmem:[%s901_s2 + $0x8] sm:$0xff] }
  0x26   : > { %673 = vmatpush3.msk.msra.mxu0 %vm343_vm1, %v305_v10  ;;  %693 = vmatpush3.msk.msra.mxu1 %vm343_vm1, %v305_v10 }
  0x27   : > { %674 = vmatprep.subr.mxu0 %v304_v11  ;;  %689 = vmatprep.subr.mxu1 %v304_v11 }
  0x28   : > { %675 = vmatpush3.msra.mxu0 %v304_v11  ;;  %694 = vmatpush3.msra.mxu1 %v304_v11 }
  0x29   : > { %676 = vmatprep.subr.mxu0 %v303_v12  ;;  %690 = vmatprep.subr.mxu1 %v303_v12 }
  0x2a   : > { %677 = vmatpush3.msra.mxu0 %v303_v12  ;;  %695 = vmatpush3.msra.mxu1 %v303_v12 }
  0x2b   : > { %678 = vmatprep.subr.mxu0 %v302_v13  ;;  %691 = vmatprep.subr.mxu1 %v302_v13 }
  0x2c   : > { %679 = vmatpush3.msra.mxu0 %v302_v13  ;;  %696 = vmatpush3.msra.mxu1 %v302_v13 }
  0x2d   : > { %680 = vmatprep.subr.mxu0 %v301_v14  ;;  %692 = vmatprep.subr.mxu1 %v301_v14 }
  0x2e   : > { %681 = vmatpush3.msra.mxu0 %v301_v14  ;;  %697 = vmatpush3.msra.mxu1 %v301_v14 }
  0x2f   : > { %683 = vmatmul.mubr.msk.f32.vlgmr.msra.gmra.mxu0 %vm330_vm0, %v298_v15  ;;  %686 = vmatmul.mubr.msk.f32.vlgmr.msra.gmra.mxu1 %vm330_vm0, %v300_v16 }
  0x30   : > { %327 = vperm.xlu1 %726, %v309_v17   ;;  %317 = vperm.xlu0 %725, %v307_v18  }
  0x9f   : > { %v313_v19 = vpop.permute.xlu0 %312  ;;  %v323_v20 = vpop.permute.xlu1 %322 }
  0xab   : > { %v318_v21 = vpop.permute.xlu0 %317  ;;  %v328_v22 = vpop.permute.xlu1 %327 }
  0xef   : > { %v684_v23 = vpop.f32.mrf.mxu0  ;;  %v687_v24 = vpop.f32.mrf.mxu1 }
  0xf0   : > { %v419_v25 = vadd.f32 %v684_v23, %v318_v21  ;;  %v429_v26 = vadd.f32 %v687_v24, %v328_v22 }
  0xf1   : > { %v413_v27 = vpop.f32.mrf.mxu0  ;;  %v423_v28 = vpop.f32.mrf.mxu1 }
  0xf2   : > { %433 = vst [vmem:[%s858_s11 + $0x8] sm:$0xff] %v419_v25  ;;  %435 = vst [vmem:[%s858_s11 + $0x18] sm:$0xff] %v429_v26  ;;  %v414_v29 = vadd.f32 %v413_v27, %v313_v19  ;;  %v424_v30 = vadd.f32 %v423_v28, %v323_v20  ;;  %442 = vadd.xlane.f32.xlu0 %v429_v26  ;;  %438 = vadd.xlane.f32.xlu1 %v419_v25 }
  0xf3   : > { %v450_v33 = vmul.f32 %v419_v25, %v419_v25  ;;  %v452_v34 = vmul.f32 %v429_v26, %v429_v26 }
  0xf4   : > { %432 = vst [vmem:[%s858_s11] sm:$0xff] %v414_v29  ;;  %434 = vst [vmem:[%s858_s11 + $0x10] sm:$0xff] %v424_v30  ;;  %v449_v31 = vmul.f32 %v414_v29, %v414_v29  ;;  %v451_v32 = vmul.f32 %v424_v30, %v424_v30 }
  0xf6   : > { %436 = vadd.xlane.f32.xlu0 %v414_v29  ;;  %453 = vadd.xlane.f32.xlu1 %v449_v31 }
  0xf9   : > { %v520_v44 = vld [vmem:[%s858_s11 + $0x8] sm:$0xff] (%p813_p5)  ;;  %v524_v46 = vld [vmem:[%s858_s11 + $0x18] sm:$0xff] (%p813_p5) }
  0xfa   : > { %440 = vadd.xlane.f32.xlu0 %v424_v30  ;;  %457 = vadd.xlane.f32.xlu1 %v451_v32  ;;  %521 = vst [vmem:[%s483_s27 + $0x20] sm:$0xff] (%p813_p5), %v520_v44  ;;  %525 = vst [vmem:[%s483_s27 + $0x60] sm:$0xff] (%p813_p5), %v524_v46 }
  0xfb   : > { %v518_v43 = vld [vmem:[%s858_s11] sm:$0xff] (%p813_p5)  ;;  %v522_v45 = vld [vmem:[%s858_s11 + $0x10] sm:$0xff] (%p813_p5) }
  0xfc   : > { %519 = vst [vmem:[%s483_s27] sm:$0xff] (%p813_p5), %v518_v43  ;;  %523 = vst [vmem:[%s483_s27 + $0x40] sm:$0xff] (%p813_p5), %v522_v45 }
  0xfe   : > { %455 = vadd.xlane.f32.xlu0 %v450_v33 }
 0x102   : > { %459 = vadd.xlane.f32.xlu0 %v452_v34 }
 0x17b   : > { %v443_v35 = vpop.xlane.xlu0 %442  ;;  %v439_v36 = vpop.xlane.xlu1 %438 }
 0x17c   : > { %448 = vst.msk [vmem:[%s289_s14 + $0x18] sm:$0xff] %vm444_vm2, %v443_v35  ;;  %446 = vst.msk [vmem:[%s289_s14 + $0x8] sm:$0xff] %vm444_vm2, %v439_v36 }
 0x17f   : > { %v437_v37 = vpop.xlane.xlu0 %436  ;;  %v454_v38 = vpop.xlane.xlu1 %453 }
 0x180   : > { %445 = vst.msk [vmem:[%s289_s14] sm:$0xff] %vm444_vm2, %v437_v37  ;;  %461 = vst.msk [vmem:[%s295_s17] sm:$0xff] %vm444_vm2, %v454_v38 }
 0x183   : > { %v441_v39 = vpop.xlane.xlu0 %440  ;;  %v458_v40 = vpop.xlane.xlu1 %457 }
 0x184   : > { %447 = vst.msk [vmem:[%s289_s14 + $0x10] sm:$0xff] %vm444_vm2, %v441_v39  ;;  %463 = vst.msk [vmem:[%s295_s17 + $0x10] sm:$0xff] %vm444_vm2, %v458_v40 }
 0x187   : > { %v456_v41 = vpop.xlane.xlu0 %455 }
 0x188   : > { %462 = vst.msk [vmem:[%s295_s17 + $0x8] sm:$0xff] %vm444_vm2, %v456_v41  ;;  %481 = sbr.rel (!%p813_p5) target bundleno = 397 (0x18d), region = 74 }
 0x18b   : > { %v460_v42 = vpop.xlane.xlu0 %459 }
 0x18c   : > { %464 = vst.msk [vmem:[%s295_s17 + $0x18] sm:$0xff] %vm444_vm2, %v460_v42 }
 0x18d PF: > { %p13_p11 = scmp.ge.s32.totalorder %s801_s22, 6   ;;  %s906_s18 = smov %s745_s19 }
 0x18e   : > { %s907_s19 = smov %s811_s25  ;;  %s908_s20 = smov %s801_s22 }
 0x18f   :  { %15 = sbr.rel (!%p13_p11) target bundleno = 2 (0x2), region = 167 }

// kernel: edge_aware_refinement_forward.18
= control target key start
LH: loop header
LB: loop body
LE: loop exit
PB: predicated region body
PF: predicated region fallthrough
CT: control target
= control target key end

     0   :  { %s611_s15 = smov 0   ;;  %s613_s16 = smov 0   ;;  %s713_s0 = inlined_call_operand.vmem [shape: f32[32,512], index: 0, kind: input, shape index: {}]   ;;  %s714_s1 = inlined_call_operand.vmem [shape: f32[32,1], index: 1, kind: input, shape index: {}]   ;;  %s715_s2 = inlined_call_operand.vmem [shape: f32[32,1], index: 2, kind: input, shape index: {}]   ;;  %s716_s3 = inlined_call_operand.vmem [shape: f32[32,512], index: 3, kind: input, shape index: {}]   ;;  %s717_s4 = inlined_call_operand.vmem [shape: f32[32,512], index: 4, kind: output, shape index: {}]  }
   0x1   :  { %s615_s17 = smov 0  }
   0x2 LB: > { %s518_s18 = sadd.s32 4294967295, %s583_s17   ;;  %s628_s19 = sadd.s32 1, %s583_s17   ;;  %s583_s17 = sphi %s615_s17, %s722_s17   ;;  %s579_s16 = sphi %s613_s16, %s721_s16   ;;  %s575_s15 = sphi %s611_s15, %s720_s15  }
   0x3   : > { %s18_s20 = ssub.s32 %s583_s17, %s628_s19  ;;  %s21_s21 = sadd.s32 1, %s579_s16 }
   0x4   : > { %p19_p0 = scmp.eq.s32.totalorder %s18_s20, 0  ;;  %p28_p1 = scmp.ne.s32.totalorder %s579_s16, %s575_s15 }
   0x5   : > { %p29_p2 = scmp.eq.s32.totalorder %s583_s17, 0  ;;  %p126_p3 = scmp.eq.s32.totalorder %s518_s18, 3 }
   0x6   : > { %s639_s22 = scalar_select %p19_p0, %s579_s16, %s21_s21  }
   0x7   : > { %p641_p4 = por %p29_p2, %p28_p1  ;;  %p645_p5 = por %p126_p3, %p28_p1 }
   0x8   : > { %p521_p6 = scmp.ge.s32.totalorder %s583_s17, 4 }
   0xa   : > { %154 = sbr.rel (%p521_p6) target bundleno = 31 (0x1f), region = 24 }
   0xf   : > { %157 = sbr.rel (!%p641_p4) target bundleno = 23 (0x17), region = 28  ;;  %s159_s25 = sand.u32 (%p641_p4), 1, %s579_s16  }
  0x10   : > { %s523_s26 = sshll.u32 (%p641_p4), %s583_s17, 3  ;;  %s522_s27 = sshll.u32 (%p641_p4), %s159_s25, 5 }
  0x11   : > { %s163_s30 = scalar_lea.vmem (%p641_p4), %s713_s0, %s523_s26  ;;  %s161_s5 = scalar_lea.vmem (%p641_p4), [#allocation2], %s522_s27 }
  0x12   : > { %v198_v0 = vld [vmem:[%s163_s30] sm:$0xff] (%p641_p4) }
  0x13   : > { %v200_v1 = vld [vmem:[%s163_s30 + $0x20] sm:$0xff] (%p641_p4)  ;;  %199 = vst [vmem:[%s161_s5] sm:$0xff] (%p641_p4), %v198_v0 }
  0x14   : > { %v202_v2 = vld [vmem:[%s163_s30 + $0x40] sm:$0xff]  ;;  %201 = vst [vmem:[%s161_s5 + $0x8] sm:$0xff] %v200_v1 }
  0x15   : > { %203 = vst [vmem:[%s161_s5 + $0x10] sm:$0xff] %v202_v2  ;;  %v204_v3 = vld [vmem:[%s163_s30 + $0x60] sm:$0xff] }
  0x16   : > { %205 = vst [vmem:[%s161_s5 + $0x18] sm:$0xff] %v204_v3 }
  0x17 PF: > { %211 = sbr.rel (!%p641_p4) target bundleno = 31 (0x1f), region = 66  ;;  %s213_s6 = sand.u32 (%p641_p4), 1, %s579_s16  }
  0x18   : > { %s525_s7 = sshll.u32 (%p641_p4), %s583_s17, 3  ;;  %s524_s8 = sshll.u32 (%p641_p4), %s213_s6, 5 }
  0x19   : > { %s217_s11 = scalar_lea.vmem (%p641_p4), %s716_s3, %s525_s7  ;;  %s215_s12 = scalar_lea.vmem (%p641_p4), [#allocation3], %s524_s8 }
  0x1a   : > { %v252_v4 = vld [vmem:[%s217_s11] sm:$0xff] (%p641_p4) }
  0x1b   : > { %v254_v5 = vld [vmem:[%s217_s11 + $0x20] sm:$0xff] (%p641_p4)  ;;  %253 = vst [vmem:[%s215_s12] sm:$0xff] (%p641_p4), %v252_v4 }
  0x1c   : > { %v256_v6 = vld [vmem:[%s217_s11 + $0x40] sm:$0xff]  ;;  %255 = vst [vmem:[%s215_s12 + $0x8] sm:$0xff] %v254_v5 }
  0x1d   : > { %257 = vst [vmem:[%s215_s12 + $0x10] sm:$0xff] %v256_v6  ;;  %v258_v7 = vld [vmem:[%s217_s11 + $0x60] sm:$0xff] }
  0x1e   : > { %259 = vst [vmem:[%s215_s12 + $0x18] sm:$0xff] %v258_v7 }
  0x1f PF: > { %p526_p7 = scmp.ge.s32.totalorder %s583_s17, 1  ;;  %p264_p8 = scmp.lt.s32.totalorder %s583_s17, 5 }
  0x21   : > { %p265_p9 = pnand %p526_p7, %p264_p8 }
  0x22   : > { %s271_s10 = sand.u32 (!%p265_p9), 1, %s575_s15  }
  0x23   : > { %268 = sbr.rel (%p265_p9) target bundleno = 194 (0xc2), region = 104  ;;  %s691_s11 = sshll.u32 (!%p265_p9), %s271_s10, 5 }
  0x24   : > { %s273_s12 = scalar_lea.vmem (!%p265_p9), [#allocation2], %s691_s11  ;;  %s280_s15 = scalar_lea.vmem (!%p265_p9), [#allocation3], %s691_s11 }
  0x25   : > { %s305_s13 = scalar_lea.vmem (!%p265_p9), [#allocation4], %s691_s11 }
  0x28   : > { %v312_v8 = vld [vmem:[%s714_s1 + $0x10] sm:$0xff]  ;;  %v310_v9 = vld [vmem:[%s714_s1] sm:$0xff]  ;;  %v585_v10 = vmov 0   ;;  %v313_v11 = vld [vmem:[%s714_s1 + $0x18] sm:$0xff]  ;;  %s531_s14 = sshll.u32 (%p645_p5), %s518_s18, 3 }
  0x29   : > { %560 = vset.pattern.permute.xlu1 %v585_v10  ;;  %559 = vset.pattern.permute.xlu0 %v585_v10  ;;  %v311_v12 = vld [vmem:[%s714_s1 + $0x8] sm:$0xff]  ;;  %v338_v14 = vld [vmem:[%s715_s2] sm:$0xff]  ;;  %v341_v15 = vld [vmem:[%s715_s2 + $0x18] sm:$0xff]  ;;  %s398_s23 = scalar_lea.vmem (%p645_p5), %s717_s4, %s531_s14 }
  0x2a   : > { %326 = vperm.xlu1 %560, %v312_v8   ;;  %316 = vperm.xlu0 %559, %v310_v9   ;;  %v339_v13 = vld [vmem:[%s715_s2 + $0x8] sm:$0xff]  ;;  %v340_v16 = vld [vmem:[%s715_s2 + $0x10] sm:$0xff]  ;;  %v306_v19 = vld [vmem:[%s273_s12] sm:$0xff] }
  0x2b   : > { %v307_v22 = vld [vmem:[%s273_s12 + $0x8] sm:$0xff]  ;;  %v308_v23 = vld [vmem:[%s273_s12 + $0x10] sm:$0xff]  ;;  %v309_v25 = vld [vmem:[%s273_s12 + $0x18] sm:$0xff] }
  0x2c   : > { %v379_v33 = vld [vmem:[%s280_s15 + $0x8] sm:$0xff]  ;;  %v378_v34 = vld [vmem:[%s280_s15] sm:$0xff]  ;;  %v381_v45 = vld [vmem:[%s280_s15 + $0x18] sm:$0xff] }
  0x2d   : > { %v380_v46 = vld [vmem:[%s280_s15 + $0x10] sm:$0xff] }
  0x2e   : > { %331 = vperm.xlu1 %560, %v313_v11   ;;  %321 = vperm.xlu0 %559, %v311_v12  }
  0x32   : > { %349 = vperm.xlu1 %560, %v339_v13   ;;  %344 = vperm.xlu0 %559, %v338_v14  }
  0x36   : > { %359 = vperm.xlu1 %560, %v341_v15   ;;  %354 = vperm.xlu0 %559, %v340_v16  }
  0xa5   : > { %v327_v17 = vpop.permute.xlu1 %326  ;;  %v317_v18 = vpop.permute.xlu0 %316 }
  0xa6   : > { %v334_v24 = vmul.f32 %v317_v18, %v306_v19  ;;  %v336_v31 = vmul.f32 %v327_v17, %v308_v23 }
  0xa9   : > { %v332_v20 = vpop.permute.xlu1 %331  ;;  %v322_v21 = vpop.permute.xlu0 %321 }
  0xaa   : > { %v335_v26 = vmul.f32 %v322_v21, %v307_v22  ;;  %v337_v32 = vmul.f32 %v332_v20, %v309_v25 }
  0xad   : > { %v350_v27 = vpop.permute.xlu1 %349  ;;  %v345_v28 = vpop.permute.xlu0 %344 }
  0xae   : > { %v363_v29 = vadd.f32 %v350_v27, %v335_v26  ;;  %v362_v30 = vadd.f32 %v345_v28, %v334_v24 }
  0xb0   : > { %vm367_vm0 = vcmp.gt.f32.partialorder %v363_v29, 0.0  ;;  %v371_v35 = vmul.f32 0.2, %v363_v29  ;;  %vm366_vm1 = vcmp.gt.f32.partialorder %v362_v30, 0.0  ;;  %v370_v36 = vmul.f32 0.2, %v362_v30 }
  0xb1   : > { %v360_v37 = vpop.permute.xlu1 %359  ;;  %v355_v38 = vpop.permute.xlu0 %354 }
  0xb2   : > { %v375_v39 = vsel %vm367_vm0, %v363_v29, %v371_v35  ;;  %v374_v40 = vsel %vm366_vm1, %v362_v30, %v370_v36  ;;  %v365_v41 = vadd.f32 %v360_v37, %v337_v32  ;;  %v364_v42 = vadd.f32 %v355_v38, %v336_v31 }
  0xb3   : > { %v383_v43 = vadd.f32 %v379_v33, %v375_v39  ;;  %v382_v44 = vadd.f32 %v378_v34, %v374_v40 }
  0xb4   : > { %vm369_vm2 = vcmp.gt.f32.partialorder %v365_v41, 0.0  ;;  %v373_v47 = vmul.f32 0.2, %v365_v41  ;;  %vm368_vm3 = vcmp.gt.f32.partialorder %v364_v42, 0.0  ;;  %v372_v48 = vmul.f32 0.2, %v364_v42 }
  0xb5   : > { %387 = vst [vmem:[%s305_s13 + $0x8] sm:$0xff] %v383_v43  ;;  %386 = vst [vmem:[%s305_s13] sm:$0xff] %v382_v44  ;;  %396 = sbr.rel (!%p645_p5) target bundleno = 194 (0xc2), region = 116 }
  0xb6   : > { %v377_v49 = vsel %vm369_vm2, %v365_v41, %v373_v47  ;;  %v376_v50 = vsel %vm368_vm3, %v364_v42, %v372_v48 }
  0xb7   : > { %v385_v51 = vadd.f32 %v381_v45, %v377_v49  ;;  %v384_v52 = vadd.f32 %v380_v46, %v376_v50 }
  0xb9   : > { %389 = vst [vmem:[%s305_s13 + $0x18] sm:$0xff] %v385_v51  ;;  %388 = vst [vmem:[%s305_s13 + $0x10] sm:$0xff] %v384_v52 }
  0xbc   : > { %v433_v53 = vld [vmem:[%s305_s13] sm:$0xff]  ;;  %v435_v54 = vld [vmem:[%s305_s13 + $0x8] sm:$0xff] }
  0xbd   : > { %434 = vst [vmem:[%s398_s23] sm:$0xff] %v433_v53  ;;  %436 = vst [vmem:[%s398_s23 + $0x20] sm:$0xff] %v435_v54 }
  0xc0   : > { %v437_v55 = vld [vmem:[%s305_s13 + $0x10] sm:$0xff]  ;;  %v439_v56 = vld [vmem:[%s305_s13 + $0x18] sm:$0xff] }
  0xc1   : > { %438 = vst [vmem:[%s398_s23 + $0x40] sm:$0xff] %v437_v55  ;;  %440 = vst [vmem:[%s398_s23 + $0x60] sm:$0xff] %v439_v56 }
  0xc2 PF: > { %p11_p10 = scmp.ge.s32.totalorder %s628_s19, 6   ;;  %s720_s15 = smov %s579_s16 }
  0xc3   : > { %s721_s16 = smov %s639_s22  ;;  %s722_s17 = smov %s628_s19 }
  0xc4   :  { %13 = sbr.rel (!%p11_p10) target bundleno = 2 (0x2), region = 193 }

// kernel: edge_aware_refinement_forward.17
= control target key start
LH: loop header
LB: loop body
LE: loop exit
PB: predicated region body
PF: predicated region fallthrough
CT: control target
= control target key end

     0   :  { %s1056_s18 = smov 0   ;;  %s1058_s19 = smov 0   ;;  %s1311_s0 = inlined_call_operand.vmem [shape: f32[288,512], index: 0, kind: input, shape index: {}]   ;;  %s1312_s1 = inlined_call_operand.vmem [shape: f32[32,288], index: 1, kind: input, shape index: {}]   ;;  %s1313_s2 = inlined_call_operand.vmem [shape: f32[32,1], index: 2, kind: input, shape index: {}]   ;;  %s1314_s3 = inlined_call_operand.vmem [shape: f32[32,512], index: 3, kind: output, shape index: {0}]   ;;  %s1315_s4 = inlined_call_operand.vmem [shape: f32[128,1], index: 4, kind: output, shape index: {1}]   ;;  %s1316_s5 = inlined_call_operand.vmem [shape: f32[128,1], index: 5, kind: output, shape index: {2}]  }
   0x1   :  { %s1060_s20 = smov 0  }
   0x2 LB: > { %s1072_s21 = sadd.s32 4294967295, %s1023_s20   ;;  %s1075_s22 = sadd.s32 1, %s1023_s20   ;;  %s1023_s20 = sphi %s1060_s20, %s1320_s20   ;;  %s1019_s19 = sphi %s1058_s19, %s1319_s19   ;;  %s1015_s18 = sphi %s1056_s18, %s1318_s18  }
   0x3   : > { %s20_s23 = ssub.s32 %s1023_s20, %s1075_s22  ;;  %s23_s24 = sadd.s32 1, %s1019_s19 }
   0x4   : > { %p21_p0 = scmp.eq.s32.totalorder %s20_s23, 0  ;;  %p30_p1 = scmp.ne.s32.totalorder %s1019_s19, %s1015_s18 }
   0x5   : > { %p31_p2 = scmp.eq.s32.totalorder %s1023_s20, 0  ;;  %p102_p3 = scmp.eq.s32.totalorder %s1072_s21, 3 }
   0x6   : > { %s1085_s25 = scalar_select %p21_p0, %s1019_s19, %s23_s24  }
   0x7   : > { %p32_p4 = por %p31_p2, %p30_p1  ;;  %p1087_p5 = por %p102_p3, %p30_p1 }
   0x8   : > { %p890_p6 = scmp.ge.s32.totalorder %s1023_s20, 4 }
   0xa   : > { %182 = sbr.rel (%p890_p6) target bundleno = 55 (0x37), region = 24 }
   0xf   : > { %185 = sbr.rel (!%p32_p4) target bundleno = 55 (0x37), region = 28  ;;  %s187_s27 = sand.u32 (%p32_p4), 1, %s1019_s19  }
  0x10   : > { %s891_s28 = sshll.u32 (%p32_p4), %s1023_s20, 3  ;;  %s972_s29 = smul.u32 (%p32_p4), 288, %s187_s27 }
  0x11   : > { %s1097_s7 = scalar_lea.vmem (%p32_p4), %s1311_s0, %s891_s28 }
  0x12   : > { %v290_v0 = vld [vmem:[%s1097_s7] sm:$0xff] (%p32_p4)  ;;  %s1105_s8 = scalar_lea.vmem (%p32_p4), [#allocation2], %s972_s29 }
  0x13   : > { %v292_v1 = vld [vmem:[%s1097_s7 + $0x20] sm:$0xff] (%p32_p4)  ;;  %291 = vst [vmem:[%s1105_s8] sm:$0xff] (%p32_p4), %v290_v0 }
  0x14   : > { %v294_v2 = vld [vmem:[%s1097_s7 + $0x40] sm:$0xff]  ;;  %293 = vst [vmem:[%s1105_s8 + $0x8] sm:$0xff] %v292_v1 }
  0x15   : > { %v296_v3 = vld [vmem:[%s1097_s7 + $0x60] sm:$0xff]  ;;  %295 = vst [vmem:[%s1105_s8 + $0x10] sm:$0xff] %v294_v2 }
  0x16   : > { %v298_v4 = vld [vmem:[%s1097_s7 + $0x80] sm:$0xff]  ;;  %297 = vst [vmem:[%s1105_s8 + $0x18] sm:$0xff] %v296_v3 }
  0x17   : > { %v300_v5 = vld [vmem:[%s1097_s7 + $0xa0] sm:$0xff]  ;;  %299 = vst [vmem:[%s1105_s8 + $0x20] sm:$0xff] %v298_v4 }
  0x18   : > { %301 = vst [vmem:[%s1105_s8 + $0x28] sm:$0xff] %v300_v5  ;;  %v302_v6 = vld [vmem:[%s1097_s7 + $0xc0] sm:$0xff] }
  0x19   : > { %v304_v7 = vld [vmem:[%s1097_s7 + $0xe0] sm:$0xff]  ;;  %303 = vst [vmem:[%s1105_s8 + $0x30] sm:$0xff] %v302_v6 }
  0x1a   : > { %v306_v8 = vld [vmem:[%s1097_s7 + $0x100] sm:$0xff]  ;;  %305 = vst [vmem:[%s1105_s8 + $0x38] sm:$0xff] %v304_v7 }
  0x1b   : > { %307 = vst [vmem:[%s1105_s8 + $0x40] sm:$0xff] %v306_v8  ;;  %v308_v9 = vld [vmem:[%s1097_s7 + $0x120] sm:$0xff] }
  0x1c   : > { %v310_v10 = vld [vmem:[%s1097_s7 + $0x140] sm:$0xff]  ;;  %309 = vst [vmem:[%s1105_s8 + $0x48] sm:$0xff] %v308_v9 }
  0x1d   : > { %v312_v11 = vld [vmem:[%s1097_s7 + $0x160] sm:$0xff]  ;;  %311 = vst [vmem:[%s1105_s8 + $0x50] sm:$0xff] %v310_v10 }
  0x1e   : > { %313 = vst [vmem:[%s1105_s8 + $0x58] sm:$0xff] %v312_v11  ;;  %v314_v12 = vld [vmem:[%s1097_s7 + $0x180] sm:$0xff] }
  0x1f   : > { %v316_v13 = vld [vmem:[%s1097_s7 + $0x1a0] sm:$0xff]  ;;  %315 = vst [vmem:[%s1105_s8 + $0x60] sm:$0xff] %v314_v12 }
  0x20   : > { %v318_v14 = vld [vmem:[%s1097_s7 + $0x1c0] sm:$0xff]  ;;  %317 = vst [vmem:[%s1105_s8 + $0x68] sm:$0xff] %v316_v13 }
  0x21   : > { %319 = vst [vmem:[%s1105_s8 + $0x70] sm:$0xff] %v318_v14  ;;  %v320_v15 = vld [vmem:[%s1097_s7 + $0x1e0] sm:$0xff] }
  0x22   : > { %v322_v16 = vld [vmem:[%s1097_s7 + $0x200] sm:$0xff]  ;;  %321 = vst [vmem:[%s1105_s8 + $0x78] sm:$0xff] %v320_v15 }
  0x23   : > { %v324_v17 = vld [vmem:[%s1097_s7 + $0x220] sm:$0xff]  ;;  %323 = vst [vmem:[%s1105_s8 + $0x80] sm:$0xff] %v322_v16 }
  0x24   : > { %325 = vst [vmem:[%s1105_s8 + $0x88] sm:$0xff] %v324_v17  ;;  %v326_v18 = vld [vmem:[%s1097_s7 + $0x240] sm:$0xff] }
  0x25   : > { %v328_v19 = vld [vmem:[%s1097_s7 + $0x260] sm:$0xff]  ;;  %327 = vst [vmem:[%s1105_s8 + $0x90] sm:$0xff] %v326_v18 }
  0x26   : > { %v330_v20 = vld [vmem:[%s1097_s7 + $0x280] sm:$0xff]  ;;  %329 = vst [vmem:[%s1105_s8 + $0x98] sm:$0xff] %v328_v19 }
  0x27   : > { %331 = vst [vmem:[%s1105_s8 + $0xa0] sm:$0xff] %v330_v20  ;;  %v332_v21 = vld [vmem:[%s1097_s7 + $0x2a0] sm:$0xff] }
  0x28   : > { %v334_v22 = vld [vmem:[%s1097_s7 + $0x2c0] sm:$0xff]  ;;  %333 = vst [vmem:[%s1105_s8 + $0xa8] sm:$0xff] %v332_v21 }
  0x29   : > { %v336_v23 = vld [vmem:[%s1097_s7 + $0x2e0] sm:$0xff]  ;;  %335 = vst [vmem:[%s1105_s8 + $0xb0] sm:$0xff] %v334_v22 }
  0x2a   : > { %337 = vst [vmem:[%s1105_s8 + $0xb8] sm:$0xff] %v336_v23  ;;  %v338_v24 = vld [vmem:[%s1097_s7 + $0x300] sm:$0xff] }
  0x2b   : > { %v340_v25 = vld [vmem:[%s1097_s7 + $0x320] sm:$0xff]  ;;  %339 = vst [vmem:[%s1105_s8 + $0xc0] sm:$0xff] %v338_v24 }
  0x2c   : > { %v342_v26 = vld [vmem:[%s1097_s7 + $0x340] sm:$0xff]  ;;  %341 = vst [vmem:[%s1105_s8 + $0xc8] sm:$0xff] %v340_v25 }
  0x2d   : > { %343 = vst [vmem:[%s1105_s8 + $0xd0] sm:$0xff] %v342_v26  ;;  %v344_v27 = vld [vmem:[%s1097_s7 + $0x360] sm:$0xff] }
  0x2e   : > { %v346_v28 = vld [vmem:[%s1097_s7 + $0x380] sm:$0xff]  ;;  %345 = vst [vmem:[%s1105_s8 + $0xd8] sm:$0xff] %v344_v27 }
  0x2f   : > { %v348_v29 = vld [vmem:[%s1097_s7 + $0x3a0] sm:$0xff]  ;;  %347 = vst [vmem:[%s1105_s8 + $0xe0] sm:$0xff] %v346_v28 }
  0x30   : > { %349 = vst [vmem:[%s1105_s8 + $0xe8] sm:$0xff] %v348_v29  ;;  %v350_v30 = vld [vmem:[%s1097_s7 + $0x3c0] sm:$0xff] }
  0x31   : > { %v352_v31 = vld [vmem:[%s1097_s7 + $0x3e0] sm:$0xff]  ;;  %351 = vst [vmem:[%s1105_s8 + $0xf0] sm:$0xff] %v350_v30 }
  0x32   : > { %v354_v32 = vld [vmem:[%s1097_s7 + $0x400] sm:$0xff]  ;;  %353 = vst [vmem:[%s1105_s8 + $0xf8] sm:$0xff] %v352_v31 }
  0x33   : > { %355 = vst [vmem:[%s1105_s8 + $0x100] sm:$0xff] %v354_v32  ;;  %v356_v33 = vld [vmem:[%s1097_s7 + $0x420] sm:$0xff] }
  0x34   : > { %v358_v34 = vld [vmem:[%s1097_s7 + $0x440] sm:$0xff]  ;;  %357 = vst [vmem:[%s1105_s8 + $0x108] sm:$0xff] %v356_v33 }
  0x35   : > { %v360_v35 = vld [vmem:[%s1097_s7 + $0x460] sm:$0xff]  ;;  %359 = vst [vmem:[%s1105_s8 + $0x110] sm:$0xff] %v358_v34 }
  0x36   : > { %361 = vst [vmem:[%s1105_s8 + $0x118] sm:$0xff] %v360_v35 }
  0x37 PF: > { %p892_p7 = scmp.ge.s32.totalorder %s1023_s20, 1  ;;  %p366_p8 = scmp.lt.s32.totalorder %s1023_s20, 5 }
  0x39   : > { %p367_p9 = pnand %p892_p7, %p366_p8 }
  0x3a   : > { %s373_s9 = sand.u32 (!%p367_p9), 1, %s1015_s18   ;;  %s894_s18 = sshll.u32 (!%p367_p9), %s1072_s21, 2 }
  0x3b   : > { %370 = sbr.rel (%p367_p9) target bundleno = 457 (0x1c9), region = 66  ;;  %s893_s7 = sshll.u32 (!%p367_p9), %s373_s9, 5 }
  0x3c   : > { %s973_s12 = smul.u32 (!%p367_p9), 288, %s373_s9  ;;  %s1270_s8 = scalar_lea.vmem (!%p367_p9), [#allocation3], %s893_s7 }
  0x3d   : > { %p410_p10 = scmp.lt.s32.totalorder (!%p367_p9), %s894_s18, 15 }
  0x3e   : > { %s1185_s15 = scalar_lea.vmem (!%p367_p9), [#allocation2], %s973_s12 }
  0x40   : > { %v422_v36 = vld [vmem:[%s1312_s1 + $0x8] sm:$0xff]  ;;  %vm493_vm0 = vcmask 261120   ;;  %v423_v37 = vld [vmem:[%s1312_s1 + $0x10] sm:$0xff]  ;;  %v1025_v38 = vmov 0   ;;  %v464_v39 = vld [vmem:[%s1185_s15 + $0xf8] sm:$0xff]  ;;  %s1322_s18 = smov (!%p410_p10, %s894_s18), 15 }
  0x41   : > { %570 = vmatprep.mubr.f32.mxu0 %v422_v36  ;;  %999 = vset.pattern.permute.xlu0 %v1025_v38  ;;  %v448_v40 = vld [vmem:[%s1185_s15 + $0x78] sm:$0xff]  ;;  %v463_v41 = vld [vmem:[%s1185_s15 + $0xf0] sm:$0xff]  ;;  %v462_v43 = vld [vmem:[%s1185_s15 + $0xe8] sm:$0xff]  ;;  %s895_s9 = sshll.u32 %s1322_s18, 3  ;;  %vm688_vm1 = vcmask 7168   ;;  %s903_s17 = sshll.u32 (%p1087_p5), %s1072_s21, 3 }
  0x42   : > { %966 = vmatprep.mubr.msk.f32.mxu1 %vm493_vm0, %v423_v37  ;;  %1000 = vset.pattern.permute.xlu1 %v1025_v38  ;;  %v447_v42 = vld [vmem:[%s1185_s15 + $0x70] sm:$0xff]  ;;  %v446_v44 = vld [vmem:[%s1185_s15 + $0x68] sm:$0xff]  ;;  %v461_v45 = vld [vmem:[%s1185_s15 + $0xe0] sm:$0xff]  ;;  %s413_s12 = scalar_lea.vmem %s1315_s4, %s895_s9  ;;  %s419_s16 = scalar_lea.vmem %s1316_s5, %s895_s9 }
  0x43   : > { %906 = vmatprep.subr.mxu0 %v464_v39  ;;  %v445_v46 = vld [vmem:[%s1185_s15 + $0x60] sm:$0xff]  ;;  %v460_v47 = vld [vmem:[%s1185_s15 + $0xd8] sm:$0xff]  ;;  %v459_v49 = vld [vmem:[%s1185_s15 + $0xd0] sm:$0xff] }
  0x44   : > { %907 = vmatpush3.msra.mxu0 %v448_v40  ;;  %v444_v48 = vld [vmem:[%s1185_s15 + $0x58] sm:$0xff]  ;;  %v443_v50 = vld [vmem:[%s1185_s15 + $0x50] sm:$0xff]  ;;  %v458_v52 = vld [vmem:[%s1185_s15 + $0xc8] sm:$0xff] }
  0x45   : > { %908 = vmatprep.subr.mxu0 %v463_v41  ;;  %v468_v51 = vld [vmem:[%s1185_s15 + $0x118] sm:$0xff]  ;;  %v467_v53 = vld [vmem:[%s1185_s15 + $0x110] sm:$0xff]  ;;  %v442_v54 = vld [vmem:[%s1185_s15 + $0x48] sm:$0xff] }
  0x46   : > { %909 = vmatpush3.msra.mxu0 %v447_v42  ;;  %958 = vmatprep.subr.mxu1 %v468_v51  ;;  %v466_v55 = vld [vmem:[%s1185_s15 + $0x108] sm:$0xff]  ;;  %v457_v56 = vld [vmem:[%s1185_s15 + $0xc0] sm:$0xff]  ;;  %v456_v59 = vld [vmem:[%s1185_s15 + $0xb8] sm:$0xff] }
  0x47   : > { %910 = vmatprep.subr.mxu0 %v462_v43  ;;  %959 = vmatpush3.msra.mxu1 %v468_v51  ;;  %v441_v57 = vld [vmem:[%s1185_s15 + $0x40] sm:$0xff]  ;;  %v440_v60 = vld [vmem:[%s1185_s15 + $0x38] sm:$0xff]  ;;  %v426_v61 = vld [vmem:[%s1312_s1 + $0x28] sm:$0xff] }
  0x48   : > { %911 = vmatpush3.msra.mxu0 %v446_v44  ;;  %960 = vmatprep.subr.mxu1 %v467_v53  ;;  %v465_v58 = vld [vmem:[%s1185_s15 + $0x100] sm:$0xff]  ;;  %v455_v62 = vld [vmem:[%s1185_s15 + $0xb0] sm:$0xff]  ;;  %v454_v2 = vld [vmem:[%s1185_s15 + $0xa8] sm:$0xff] }
  0x49   : > { %912 = vmatprep.subr.mxu0 %v461_v45  ;;  %961 = vmatpush3.msra.mxu1 %v467_v53  ;;  %v429_v63 = vld [vmem:[%s1312_s1 + $0x40] sm:$0xff]  ;;  %v439_v0 = vld [vmem:[%s1185_s15 + $0x30] sm:$0xff]  ;;  %v438_v4 = vld [vmem:[%s1185_s15 + $0x28] sm:$0xff] }
  0x4a   : > { %913 = vmatpush3.msra.mxu0 %v445_v46  ;;  %962 = vmatprep.subr.mxu1 %v466_v55  ;;  %v469_v1 = vld [vmem:[%s1313_s2] sm:$0xff]  ;;  %v471_v3 = vld [vmem:[%s1313_s2 + $0x10] sm:$0xff]  ;;  %v432_v5 = vld [vmem:[%s1312_s1 + $0x58] sm:$0xff] }
  0x4b   : > { %914 = vmatprep.subr.mxu0 %v460_v47  ;;  %963 = vmatpush3.msra.mxu1 %v466_v55  ;;  %v453_v6 = vld [vmem:[%s1185_s15 + $0xa0] sm:$0xff]  ;;  %v470_v8 = vld [vmem:[%s1313_s2 + $0x8] sm:$0xff]  ;;  %v452_v9 = vld [vmem:[%s1185_s15 + $0x98] sm:$0xff] }
  0x4c   : > { %915 = vmatpush3.msra.mxu0 %v444_v48  ;;  %964 = vmatprep.subr.mxu1 %v465_v58  ;;  %v437_v7 = vld [vmem:[%s1185_s15 + $0x20] sm:$0xff]  ;;  %v472_v10 = vld [vmem:[%s1313_s2 + $0x18] sm:$0xff]  ;;  %v451_v12 = vld [vmem:[%s1185_s15 + $0x90] sm:$0xff] }
  0x4d   : > { %916 = vmatprep.subr.mxu0 %v459_v49  ;;  %965 = vmatpush3.msra.mxu1 %v465_v58  ;;  %v436_v11 = vld [vmem:[%s1185_s15 + $0x18] sm:$0xff]  ;;  %v435_v13 = vld [vmem:[%s1185_s15 + $0x10] sm:$0xff]  ;;  %v450_v14 = vld [vmem:[%s1185_s15 + $0x88] sm:$0xff] }
  0x4e   : > { %917 = vmatpush3.msra.mxu0 %v443_v50  ;;  %967 = vmatmul.mubr.msk.f32.vlgmr.msra.gmra.mxu1 %vm493_vm0, %v426_v61  ;;  %v434_v15 = vld [vmem:[%s1185_s15 + $0x8] sm:$0xff]  ;;  %v449_v16 = vld [vmem:[%s1185_s15 + $0x80] sm:$0xff]  ;;  %v424_v20 = vld [vmem:[%s1312_s1 + $0x18] sm:$0xff] }
  0x4f   : > { %918 = vmatprep.subr.mxu0 %v458_v52  ;;  %969 = vmatprep.mubr.msk.f32.mxu1 %vm493_vm0, %v429_v63  ;;  %v433_v17 = vld [vmem:[%s1185_s15] sm:$0xff]  ;;  %v428_v21 = vld [vmem:[%s1312_s1 + $0x38] sm:$0xff]  ;;  %v427_v22 = vld [vmem:[%s1312_s1 + $0x30] sm:$0xff]  ;;  %s727_s15 = scalar_lea.vmem (%p1087_p5), %s1314_s3, %s903_s17 }
  0x50   : > { %919 = vmatpush3.msra.mxu0 %v442_v54  ;;  %475 = vperm.xlu0 %999, %v469_v1   ;;  %v421_v18 = vld [vmem:[%s1312_s1] sm:$0xff]  ;;  %v431_v23 = vld [vmem:[%s1312_s1 + $0x50] sm:$0xff]  ;;  %v430_v24 = vld [vmem:[%s1312_s1 + $0x48] sm:$0xff] }
  0x51   : > { %920 = vmatprep.subr.mxu0 %v457_v56  ;;  %485 = vperm.xlu1 %1000, %v471_v3   ;;  %v425_v19 = vld [vmem:[%s1312_s1 + $0x20] sm:$0xff] }
  0x52   : > { %921 = vmatpush3.msra.mxu0 %v441_v57  ;;  %970 = vmatmul.mubr.msk.f32.gmra.mxu1 %vm493_vm0, %v432_v5 }
  0x53   : > { %922 = vmatprep.subr.mxu0 %v456_v59 }
  0x54   : > { %923 = vmatpush3.msra.mxu0 %v440_v60  ;;  %480 = vperm.xlu0 %999, %v470_v8  }
  0x55   : > { %924 = vmatprep.subr.mxu0 %v455_v62  ;;  %490 = vperm.xlu1 %1000, %v472_v10  }
  0x56   : > { %925 = vmatpush3.msra.mxu0 %v439_v0 }
  0x57   : > { %926 = vmatprep.subr.mxu0 %v454_v2 }
  0x58   : > { %927 = vmatpush3.msra.mxu0 %v438_v4 }
  0x59   : > { %928 = vmatprep.subr.mxu0 %v453_v6 }
  0x5a   : > { %929 = vmatpush3.msra.mxu0 %v437_v7 }
  0x5b   : > { %930 = vmatprep.subr.mxu0 %v452_v9 }
  0x5c   : > { %931 = vmatpush3.msra.mxu0 %v436_v11 }
  0x5d   : > { %932 = vmatprep.subr.mxu0 %v451_v12 }
  0x5e   : > { %933 = vmatpush3.msra.mxu0 %v435_v13 }
  0x5f   : > { %934 = vmatprep.subr.mxu0 %v450_v14 }
  0x60   : > { %935 = vmatpush3.msra.mxu0 %v434_v15 }
  0x61   : > { %936 = vmatprep.subr.mxu0 %v449_v16 }
  0x62   : > { %937 = vmatpush3.msra.mxu0 %v433_v17 }
  0x63   : > { %571 = vmatmul.mubr.f32.vlgmr.msra.gmra.mxu0 %v421_v18 }
  0x64   : > { %575 = vmatprep.mubr.f32.mxu0 %v425_v19 }
  0x67   : > { %576 = vmatmul.mubr.f32.gmra.mxu0 %v424_v20 }
  0x68   : > { %580 = vmatprep.mubr.f32.mxu0 %v428_v21 }
  0x6b   : > { %581 = vmatmul.mubr.f32.gmra.mxu0 %v427_v22 }
  0x6c   : > { %585 = vmatprep.mubr.f32.mxu0 %v431_v23 }
  0x6f   : > { %586 = vmatmul.mubr.f32.gmra.mxu0 %v430_v24 }
  0xcb   : > { %v476_v27 = vpop.permute.xlu0 %475 }
  0xcc   : > { %v486_v41 = vpop.permute.xlu1 %485 }
  0xcf   : > { %v481_v34 = vpop.permute.xlu0 %480 }
  0xd0   : > { %v491_v52 = vpop.permute.xlu1 %490 }
 0x10e   : > { %v968_v26 = vpop.f32.mrf.mxu1 }
 0x110   : > { %v657_v31 = vpop.f32.mrf.mxu1 }
 0x112   : > { %v971_v38 = vpop.f32.mrf.mxu1 }
 0x114   : > { %v667_v46 = vpop.f32.mrf.mxu1 }
 0x123   : > { %v938_v25 = vpop.f32.mrf.mxu0 }
 0x125   : > { %v939_v28 = vpop.f32.mrf.mxu0 }
 0x126   : > { %v940_v29 = vadd.f32 %v939_v28, %v938_v25 }
 0x127   : > { %v941_v30 = vpop.f32.mrf.mxu0 }
 0x128   : > { %v573_v32 = vadd.f32 %v940_v29, %v476_v27 }
 0x129   : > { %v942_v33 = vpop.f32.mrf.mxu0 }
 0x12a   : > { %v943_v35 = vadd.f32 %v942_v33, %v941_v30  ;;  %v658_v36 = vadd.f32 %v657_v31, %v573_v32 }
 0x12b   : > { %v944_v37 = vpop.f32.mrf.mxu0 }
 0x12c   : > { %v578_v39 = vadd.f32 %v943_v35, %v481_v34  ;;  %676 = vst [vmem:[%s1270_s8] sm:$0xff] %v658_v36  ;;  %680 = vadd.xlane.f32.xlu0 %v658_v36  ;;  %v693_v40 = vmul.f32 %v658_v36, %v658_v36 }
 0x12d   : > { %v945_v42 = vpop.f32.mrf.mxu0 }
 0x12e   : > { %v663_v43 = vadd.f32 %v968_v26, %v578_v39  ;;  %v946_v44 = vadd.f32 %v945_v42, %v944_v37  ;;  %697 = vadd.xlane.f32.xlu1 %v693_v40 }
 0x12f   : > { %v947_v45 = vpop.f32.mrf.mxu0 }
 0x130   : > { %677 = vst [vmem:[%s1270_s8 + $0x8] sm:$0xff] %v663_v43  ;;  %v583_v47 = vadd.f32 %v946_v44, %v486_v41  ;;  %v694_v48 = vmul.f32 %v663_v43, %v663_v43 }
 0x131   : > { %v948_v49 = vpop.f32.mrf.mxu0 }
 0x132   : > { %v949_v50 = vadd.f32 %v948_v49, %v947_v45  ;;  %v668_v51 = vadd.f32 %v667_v46, %v583_v47  ;;  %699 = vadd.xlane.f32.xlu0 %v694_v48  ;;  %682 = vadd.xlane.f32.xlu1 %v663_v43 }
 0x133   : > { %v762_v1 = vld [vmem:[%s1270_s8] sm:$0xff] (%p1087_p5) }
 0x134   : > { %v588_v53 = vadd.f32 %v949_v50, %v491_v52  ;;  %678 = vst [vmem:[%s1270_s8 + $0x10] sm:$0xff] %v668_v51  ;;  %v695_v54 = vmul.f32 %v668_v51, %v668_v51  ;;  %763 = vst [vmem:[%s727_s15] sm:$0xff] (%p1087_p5), %v762_v1 }
 0x136   : > { %684 = vadd.xlane.f32.xlu0 %v668_v51  ;;  %701 = vadd.xlane.f32.xlu1 %v695_v54  ;;  %v673_v55 = vadd.f32 %v971_v38, %v588_v53 }
 0x137   : > { %v764_v2 = vld [vmem:[%s1270_s8 + $0x8] sm:$0xff] (%p1087_p5) }
 0x138   : > { %679 = vst [vmem:[%s1270_s8 + $0x18] sm:$0xff] %v673_v55  ;;  %v696_v56 = vmul.f32 %v673_v55, %v673_v55  ;;  %765 = vst [vmem:[%s727_s15 + $0x20] sm:$0xff] (%p1087_p5), %v764_v2 }
 0x13a   : > { %686 = vadd.xlane.f32.xlu0 %v673_v55 }
 0x13b   : > { %v766_v3 = vld [vmem:[%s1270_s8 + $0x10] sm:$0xff] (%p1087_p5) }
 0x13c   : > { %767 = vst [vmem:[%s727_s15 + $0x40] sm:$0xff] (%p1087_p5), %v766_v3 }
 0x13e   : > { %703 = vadd.xlane.f32.xlu0 %v696_v56 }
 0x13f   : > { %v768_v4 = vld [vmem:[%s1270_s8 + $0x18] sm:$0xff] (%p1087_p5) }
 0x140   : > { %769 = vst [vmem:[%s727_s15 + $0x60] sm:$0xff] (%p1087_p5), %v768_v4 }
 0x1b5   : > { %v681_v57 = vpop.xlane.xlu0 %680 }
 0x1b6   : > { %689 = vst.msk [vmem:[%s413_s12] sm:$0xff] %vm688_vm1, %v681_v57 }
 0x1b7   : > { %v698_v58 = vpop.xlane.xlu1 %697 }
 0x1b8   : > { %705 = vst.msk [vmem:[%s419_s16] sm:$0xff] %vm688_vm1, %v698_v58 }
 0x1bb   : > { %v700_v59 = vpop.xlane.xlu0 %699  ;;  %v683_v60 = vpop.xlane.xlu1 %682 }
 0x1bc   : > { %706 = vst.msk [vmem:[%s419_s16 + $0x8] sm:$0xff] %vm688_vm1, %v700_v59  ;;  %690 = vst.msk [vmem:[%s413_s12 + $0x8] sm:$0xff] %vm688_vm1, %v683_v60 }
 0x1bf   : > { %v685_v61 = vpop.xlane.xlu0 %684  ;;  %v702_v62 = vpop.xlane.xlu1 %701 }
 0x1c0   : > { %691 = vst.msk [vmem:[%s413_s12 + $0x10] sm:$0xff] %vm688_vm1, %v685_v61  ;;  %707 = vst.msk [vmem:[%s419_s16 + $0x10] sm:$0xff] %vm688_vm1, %v702_v62 }
 0x1c3   : > { %v687_v63 = vpop.xlane.xlu0 %686 }
 0x1c4   : > { %692 = vst.msk [vmem:[%s413_s12 + $0x18] sm:$0xff] %vm688_vm1, %v687_v63  ;;  %725 = sbr.rel (!%p1087_p5) target bundleno = 457 (0x1c9), region = 74 }
 0x1c7   : > { %v704_v0 = vpop.xlane.xlu0 %703 }
 0x1c8   : > { %708 = vst.msk [vmem:[%s419_s16 + $0x18] sm:$0xff] %vm688_vm1, %v704_v0 }
 0x1c9 PF: > { %p13_p11 = scmp.ge.s32.totalorder %s1075_s22, 6   ;;  %s1318_s18 = smov %s1019_s19 }
 0x1ca   : > { %s1319_s19 = smov %s1085_s25  ;;  %s1320_s20 = smov %s1075_s22 }
 0x1cb   :  { %15 = sbr.rel (!%p13_p11) target bundleno = 2 (0x2), region = 167 }

// kernel: edge_aware_refinement_forward.29
= control target key start
LH: loop header
LB: loop body
LE: loop exit
PB: predicated region body
PF: predicated region fallthrough
CT: control target
= control target key end

     0   :  { %s1160_s0 = inlined_call_operand.vmem [shape: f32[288,512], index: 0, kind: input, shape index: {}]   ;;  %s1161_s1 = inlined_call_operand.vmem [shape: f32[1,512], index: 1, kind: input, shape index: {}]   ;;  %s1162_s2 = inlined_call_operand.vmem [shape: f32[288,1], index: 2, kind: input, shape index: {}]   ;;  %s1163_s3 = inlined_call_operand.<no memory space> [shape: f32[1,1], index: 3, kind: input, shape index: {}]   ;;  %s1164_s4 = inlined_call_operand.vmem [shape: f32[1,512], index: 4, kind: output, shape index: {}]  }
   0x1   :  { %v9_v0 = vstv %s1163_s3 }
   0x2   :  { %10 = vst [vmem:[#allocation2] sm:$0x1] %v9_v0 }
   0x3   :  { %s881_s17 = smov 0   ;;  %s883_s18 = smov 0  }
   0x4   :  { %s885_s19 = smov 0  }
   0x5 LB: > { %s791_s3 = sadd.s32 4294967295, %s850_s19   ;;  %s898_s20 = sadd.s32 1, %s850_s19   ;;  %s850_s19 = sphi %s885_s19, %s1167_s19   ;;  %s846_s18 = sphi %s883_s18, %s1166_s18   ;;  %s842_s17 = sphi %s881_s17, %s1165_s17  }
   0x6   : > { %s20_s21 = ssub.s32 %s850_s19, %s898_s20  ;;  %s23_s22 = sadd.s32 1, %s846_s18 }
   0x7   : > { %p21_p0 = scmp.eq.s32.totalorder %s20_s21, 0  ;;  %p30_p1 = scmp.ne.s32.totalorder %s846_s18, %s842_s17 }
   0x8   : > { %p31_p2 = scmp.eq.s32.totalorder %s850_s19, 0  ;;  %p794_p4 = scmp.ge.s32.totalorder %s850_s19, 4 }
   0x9   : > { %s907_s23 = scalar_select %p21_p0, %s846_s18, %s23_s22  }
   0xa   : > { %p32_p3 = por %p31_p2, %p30_p1  ;;  %156 = sbr.rel (%p794_p4) target bundleno = 55 (0x37), region = 24 }
   0xf   : > { %159 = sbr.rel (!%p32_p3) target bundleno = 55 (0x37), region = 28  ;;  %s161_s24 = sand.u32 (%p32_p3), 1, %s846_s18  }
  0x10   : > { %s795_s25 = sshll.u32 (%p32_p3), %s850_s19, 3  ;;  %s799_s26 = smul.u32 (%p32_p3), 288, %s161_s24 }
  0x11   : > { %s915_s29 = scalar_lea.vmem (%p32_p3), %s1160_s0, %s795_s25 }
  0x12   : > { %v264_v1 = vld [vmem:[%s915_s29] sm:$0xff] (%p32_p3)  ;;  %s923_s30 = scalar_lea.vmem (%p32_p3), [#allocation3], %s799_s26 }
  0x13   : > { %v266_v2 = vld [vmem:[%s915_s29 + $0x20] sm:$0xff] (%p32_p3)  ;;  %265 = vst [vmem:[%s923_s30] sm:$0xff] (%p32_p3), %v264_v1 }
  0x14   : > { %v268_v3 = vld [vmem:[%s915_s29 + $0x40] sm:$0xff]  ;;  %267 = vst [vmem:[%s923_s30 + $0x8] sm:$0xff] %v266_v2 }
  0x15   : > { %v270_v4 = vld [vmem:[%s915_s29 + $0x60] sm:$0xff]  ;;  %269 = vst [vmem:[%s923_s30 + $0x10] sm:$0xff] %v268_v3 }
  0x16   : > { %v272_v5 = vld [vmem:[%s915_s29 + $0x80] sm:$0xff]  ;;  %271 = vst [vmem:[%s923_s30 + $0x18] sm:$0xff] %v270_v4 }
  0x17   : > { %v274_v6 = vld [vmem:[%s915_s29 + $0xa0] sm:$0xff]  ;;  %273 = vst [vmem:[%s923_s30 + $0x20] sm:$0xff] %v272_v5 }
  0x18   : > { %275 = vst [vmem:[%s923_s30 + $0x28] sm:$0xff] %v274_v6  ;;  %v276_v7 = vld [vmem:[%s915_s29 + $0xc0] sm:$0xff] }
  0x19   : > { %v278_v8 = vld [vmem:[%s915_s29 + $0xe0] sm:$0xff]  ;;  %277 = vst [vmem:[%s923_s30 + $0x30] sm:$0xff] %v276_v7 }
  0x1a   : > { %v280_v9 = vld [vmem:[%s915_s29 + $0x100] sm:$0xff]  ;;  %279 = vst [vmem:[%s923_s30 + $0x38] sm:$0xff] %v278_v8 }
  0x1b   : > { %281 = vst [vmem:[%s923_s30 + $0x40] sm:$0xff] %v280_v9  ;;  %v282_v10 = vld [vmem:[%s915_s29 + $0x120] sm:$0xff] }
  0x1c   : > { %v284_v11 = vld [vmem:[%s915_s29 + $0x140] sm:$0xff]  ;;  %283 = vst [vmem:[%s923_s30 + $0x48] sm:$0xff] %v282_v10 }
  0x1d   : > { %v286_v12 = vld [vmem:[%s915_s29 + $0x160] sm:$0xff]  ;;  %285 = vst [vmem:[%s923_s30 + $0x50] sm:$0xff] %v284_v11 }
  0x1e   : > { %287 = vst [vmem:[%s923_s30 + $0x58] sm:$0xff] %v286_v12  ;;  %v288_v13 = vld [vmem:[%s915_s29 + $0x180] sm:$0xff] }
  0x1f   : > { %v290_v14 = vld [vmem:[%s915_s29 + $0x1a0] sm:$0xff]  ;;  %289 = vst [vmem:[%s923_s30 + $0x60] sm:$0xff] %v288_v13 }
  0x20   : > { %v292_v15 = vld [vmem:[%s915_s29 + $0x1c0] sm:$0xff]  ;;  %291 = vst [vmem:[%s923_s30 + $0x68] sm:$0xff] %v290_v14 }
  0x21   : > { %293 = vst [vmem:[%s923_s30 + $0x70] sm:$0xff] %v292_v15  ;;  %v294_v16 = vld [vmem:[%s915_s29 + $0x1e0] sm:$0xff] }
  0x22   : > { %v296_v17 = vld [vmem:[%s915_s29 + $0x200] sm:$0xff]  ;;  %295 = vst [vmem:[%s923_s30 + $0x78] sm:$0xff] %v294_v16 }
  0x23   : > { %v298_v18 = vld [vmem:[%s915_s29 + $0x220] sm:$0xff]  ;;  %297 = vst [vmem:[%s923_s30 + $0x80] sm:$0xff] %v296_v17 }
  0x24   : > { %299 = vst [vmem:[%s923_s30 + $0x88] sm:$0xff] %v298_v18  ;;  %v300_v19 = vld [vmem:[%s915_s29 + $0x240] sm:$0xff] }
  0x25   : > { %v302_v20 = vld [vmem:[%s915_s29 + $0x260] sm:$0xff]  ;;  %301 = vst [vmem:[%s923_s30 + $0x90] sm:$0xff] %v300_v19 }
  0x26   : > { %v304_v21 = vld [vmem:[%s915_s29 + $0x280] sm:$0xff]  ;;  %303 = vst [vmem:[%s923_s30 + $0x98] sm:$0xff] %v302_v20 }
  0x27   : > { %305 = vst [vmem:[%s923_s30 + $0xa0] sm:$0xff] %v304_v21  ;;  %v306_v22 = vld [vmem:[%s915_s29 + $0x2a0] sm:$0xff] }
  0x28   : > { %v308_v23 = vld [vmem:[%s915_s29 + $0x2c0] sm:$0xff]  ;;  %307 = vst [vmem:[%s923_s30 + $0xa8] sm:$0xff] %v306_v22 }
  0x29   : > { %v310_v24 = vld [vmem:[%s915_s29 + $0x2e0] sm:$0xff]  ;;  %309 = vst [vmem:[%s923_s30 + $0xb0] sm:$0xff] %v308_v23 }
  0x2a   : > { %311 = vst [vmem:[%s923_s30 + $0xb8] sm:$0xff] %v310_v24  ;;  %v312_v25 = vld [vmem:[%s915_s29 + $0x300] sm:$0xff] }
  0x2b   : > { %v314_v26 = vld [vmem:[%s915_s29 + $0x320] sm:$0xff]  ;;  %313 = vst [vmem:[%s923_s30 + $0xc0] sm:$0xff] %v312_v25 }
  0x2c   : > { %v316_v27 = vld [vmem:[%s915_s29 + $0x340] sm:$0xff]  ;;  %315 = vst [vmem:[%s923_s30 + $0xc8] sm:$0xff] %v314_v26 }
  0x2d   : > { %317 = vst [vmem:[%s923_s30 + $0xd0] sm:$0xff] %v316_v27  ;;  %v318_v28 = vld [vmem:[%s915_s29 + $0x360] sm:$0xff] }
  0x2e   : > { %v320_v29 = vld [vmem:[%s915_s29 + $0x380] sm:$0xff]  ;;  %319 = vst [vmem:[%s923_s30 + $0xd8] sm:$0xff] %v318_v28 }
  0x2f   : > { %v322_v30 = vld [vmem:[%s915_s29 + $0x3a0] sm:$0xff]  ;;  %321 = vst [vmem:[%s923_s30 + $0xe0] sm:$0xff] %v320_v29 }
  0x30   : > { %323 = vst [vmem:[%s923_s30 + $0xe8] sm:$0xff] %v322_v30  ;;  %v324_v31 = vld [vmem:[%s915_s29 + $0x3c0] sm:$0xff] }
  0x31   : > { %v326_v32 = vld [vmem:[%s915_s29 + $0x3e0] sm:$0xff]  ;;  %325 = vst [vmem:[%s923_s30 + $0xf0] sm:$0xff] %v324_v31 }
  0x32   : > { %v328_v33 = vld [vmem:[%s915_s29 + $0x400] sm:$0xff]  ;;  %327 = vst [vmem:[%s923_s30 + $0xf8] sm:$0xff] %v326_v32 }
  0x33   : > { %329 = vst [vmem:[%s923_s30 + $0x100] sm:$0xff] %v328_v33  ;;  %v330_v34 = vld [vmem:[%s915_s29 + $0x420] sm:$0xff] }
  0x34   : > { %v332_v35 = vld [vmem:[%s915_s29 + $0x440] sm:$0xff]  ;;  %331 = vst [vmem:[%s923_s30 + $0x108] sm:$0xff] %v330_v34 }
  0x35   : > { %v334_v36 = vld [vmem:[%s915_s29 + $0x460] sm:$0xff]  ;;  %333 = vst [vmem:[%s923_s30 + $0x110] sm:$0xff] %v332_v35 }
  0x36   : > { %335 = vst [vmem:[%s923_s30 + $0x118] sm:$0xff] %v334_v36 }
  0x37 PF: > { %p796_p5 = scmp.ge.s32.totalorder %s850_s19, 1  ;;  %p346_p6 = scmp.lt.s32.totalorder %s850_s19, 5 }
  0x39   : > { %p347_p7 = pnand %p796_p5, %p346_p6 }
  0x3a   : > { %s353_s14 = sand.u32 (!%p347_p7), 1, %s842_s17   ;;  %p379_p8 = scmp.lt.s32.totalorder (!%p347_p7), %s791_s3, 3 }
  0x3b   : > { %350 = sbr.rel (%p347_p7) target bundleno = 285 (0x11d), region = 70 }
  0x3c   : > { %s800_s15 = smul.u32 (!%p347_p7), 288, %s353_s14 }
  0x3e   : > { %s1102_s16 = scalar_lea.vmem (!%p347_p7), [#allocation3], %s800_s15 }
  0x40   : > { %v423_v37 = vld [vmem:[%s1162_s2 + $0x10] sm:$0xff]  ;;  %v421_v38 = vld [vmem:[%s1162_s2] sm:$0xff]  ;;  %v852_v39 = vmov 0   ;;  %v424_v40 = vld [vmem:[%s1162_s2 + $0x18] sm:$0xff]  ;;  %s1169_s3 = smov (!%p379_p8, %s791_s3), 3 }
  0x41   : > { %827 = vset.pattern.permute.xlu1 %v852_v39  ;;  %826 = vset.pattern.permute.xlu0 %v852_v39  ;;  %v422_v41 = vld [vmem:[%s1162_s2 + $0x8] sm:$0xff]  ;;  %v425_v43 = vld [vmem:[%s1162_s2 + $0x20] sm:$0xff]  ;;  %v428_v44 = vld [vmem:[%s1162_s2 + $0x38] sm:$0xff]  ;;  %s381_s22 = scalar_lea.vmem %s1161_s1, %s1169_s3  ;;  %s384_s26 = scalar_lea.vmem %s1164_s4, %s1169_s3 }
  0x42   : > { %469 = vperm.xlu1 %827, %v423_v37   ;;  %459 = vperm.xlu0 %826, %v421_v38   ;;  %v426_v42 = vld [vmem:[%s1162_s2 + $0x28] sm:$0xff]  ;;  %v427_v45 = vld [vmem:[%s1162_s2 + $0x30] sm:$0xff]  ;;  %v429_v47 = vld [vmem:[%s1162_s2 + $0x40] sm:$0xff] }
  0x43   : > { %v430_v46 = vld [vmem:[%s1162_s2 + $0x48] sm:$0xff]  ;;  %v432_v48 = vld [vmem:[%s1162_s2 + $0x58] sm:$0xff]  ;;  %v431_v49 = vld [vmem:[%s1162_s2 + $0x50] sm:$0xff] }
  0x44   : > { %v434_v50 = vld [vmem:[%s1162_s2 + $0x68] sm:$0xff]  ;;  %v433_v51 = vld [vmem:[%s1162_s2 + $0x60] sm:$0xff]  ;;  %v436_v52 = vld [vmem:[%s1162_s2 + $0x78] sm:$0xff] }
  0x45   : > { %v435_v53 = vld [vmem:[%s1162_s2 + $0x70] sm:$0xff]  ;;  %v438_v54 = vld [vmem:[%s1162_s2 + $0x88] sm:$0xff]  ;;  %v437_v55 = vld [vmem:[%s1162_s2 + $0x80] sm:$0xff] }
  0x46   : > { %474 = vperm.xlu1 %827, %v424_v40   ;;  %464 = vperm.xlu0 %826, %v422_v41   ;;  %v440_v56 = vld [vmem:[%s1162_s2 + $0x98] sm:$0xff]  ;;  %v439_v57 = vld [vmem:[%s1162_s2 + $0x90] sm:$0xff]  ;;  %v442_v58 = vld [vmem:[%s1162_s2 + $0xa8] sm:$0xff] }
  0x47   : > { %v441_v59 = vld [vmem:[%s1162_s2 + $0xa0] sm:$0xff]  ;;  %v444_v60 = vld [vmem:[%s1162_s2 + $0xb8] sm:$0xff]  ;;  %v443_v61 = vld [vmem:[%s1162_s2 + $0xb0] sm:$0xff] }
  0x48   : > { %v446_v62 = vld [vmem:[%s1162_s2 + $0xc8] sm:$0xff]  ;;  %v445_v63 = vld [vmem:[%s1162_s2 + $0xc0] sm:$0xff]  ;;  %v448_v0 = vld [vmem:[%s1162_s2 + $0xd8] sm:$0xff] }
  0x49   : > { %v447_v1 = vld [vmem:[%s1162_s2 + $0xd0] sm:$0xff]  ;;  %v450_v2 = vld [vmem:[%s1162_s2 + $0xe8] sm:$0xff]  ;;  %v449_v3 = vld [vmem:[%s1162_s2 + $0xe0] sm:$0xff] }
  0x4a   : > { %484 = vperm.xlu1 %827, %v426_v42   ;;  %479 = vperm.xlu0 %826, %v425_v43   ;;  %v452_v4 = vld [vmem:[%s1162_s2 + $0xf8] sm:$0xff]  ;;  %v451_v5 = vld [vmem:[%s1162_s2 + $0xf0] sm:$0xff]  ;;  %v454_v6 = vld [vmem:[%s1162_s2 + $0x108] sm:$0xff] }
  0x4b   : > { %v453_v7 = vld [vmem:[%s1162_s2 + $0x100] sm:$0xff]  ;;  %v456_v8 = vld [vmem:[%s1162_s2 + $0x118] sm:$0xff]  ;;  %v455_v9 = vld [vmem:[%s1162_s2 + $0x110] sm:$0xff] }
  0x4c   : > { %v714_v10 = vld [vmem:[#allocation2] sm:$0x1]  ;;  %v385_v13 = vld [vmem:[%s1102_s16] sm:$0xff]  ;;  %v386_v14 = vld [vmem:[%s1102_s16 + $0x8] sm:$0xff] }
  0x4d   : > { %v387_v15 = vld [vmem:[%s1102_s16 + $0x10] sm:$0xff]  ;;  %v388_v20 = vld [vmem:[%s1102_s16 + $0x18] sm:$0xff]  ;;  %v389_v25 = vld [vmem:[%s1102_s16 + $0x20] sm:$0xff] }
  0x4e   : > { %494 = vperm.xlu1 %827, %v428_v44   ;;  %489 = vperm.xlu0 %826, %v427_v45   ;;  %v390_v28 = vld [vmem:[%s1102_s16 + $0x28] sm:$0xff]  ;;  %v391_v33 = vld [vmem:[%s1102_s16 + $0x30] sm:$0xff]  ;;  %v392_v36 = vld [vmem:[%s1102_s16 + $0x38] sm:$0xff] }
  0x4f   : > { %v393_v41 = vld [vmem:[%s1102_s16 + $0x40] sm:$0xff]  ;;  %v394_v44 = vld [vmem:[%s1102_s16 + $0x48] sm:$0xff] }
  0x52   : > { %504 = vperm.xlu1 %827, %v430_v46   ;;  %499 = vperm.xlu0 %826, %v429_v47  }
  0x56   : > { %514 = vperm.xlu1 %827, %v432_v48   ;;  %509 = vperm.xlu0 %826, %v431_v49   ;;  %v395_v49 = vld [vmem:[%s1102_s16 + $0x50] sm:$0xff] }
  0x5a   : > { %524 = vperm.xlu1 %827, %v434_v50   ;;  %519 = vperm.xlu0 %826, %v433_v51  }
  0x5e   : > { %534 = vperm.xlu1 %827, %v436_v52   ;;  %529 = vperm.xlu0 %826, %v435_v53   ;;  %v396_v52 = vld [vmem:[%s1102_s16 + $0x58] sm:$0xff] }
  0x62   : > { %544 = vperm.xlu1 %827, %v438_v54   ;;  %539 = vperm.xlu0 %826, %v437_v55  }
  0x66   : > { %554 = vperm.xlu1 %827, %v440_v56   ;;  %549 = vperm.xlu0 %826, %v439_v57   ;;  %v397_v57 = vld [vmem:[%s1102_s16 + $0x60] sm:$0xff] }
  0x6a   : > { %564 = vperm.xlu1 %827, %v442_v58   ;;  %559 = vperm.xlu0 %826, %v441_v59  }
  0x6e   : > { %574 = vperm.xlu1 %827, %v444_v60   ;;  %569 = vperm.xlu0 %826, %v443_v61   ;;  %v398_v60 = vld [vmem:[%s1102_s16 + $0x68] sm:$0xff] }
  0x72   : > { %584 = vperm.xlu1 %827, %v446_v62   ;;  %579 = vperm.xlu0 %826, %v445_v63  }
  0x76   : > { %594 = vperm.xlu1 %827, %v448_v0   ;;  %589 = vperm.xlu0 %826, %v447_v1   ;;  %v399_v1 = vld [vmem:[%s1102_s16 + $0x70] sm:$0xff] }
  0x7a   : > { %604 = vperm.xlu1 %827, %v450_v2   ;;  %599 = vperm.xlu0 %826, %v449_v3  }
  0x7e   : > { %614 = vperm.xlu1 %827, %v452_v4   ;;  %609 = vperm.xlu0 %826, %v451_v5   ;;  %v400_v4 = vld [vmem:[%s1102_s16 + $0x78] sm:$0xff] }
  0x82   : > { %624 = vperm.xlu1 %827, %v454_v6   ;;  %619 = vperm.xlu0 %826, %v453_v7  }
  0x86   : > { %634 = vperm.xlu1 %827, %v456_v8   ;;  %629 = vperm.xlu0 %826, %v455_v9   ;;  %v401_v9 = vld [vmem:[%s1102_s16 + $0x80] sm:$0xff] }
  0x8a   : > { %717 = vperm.xlu0 %826, %v714_v10  }
  0xbd   : > { %v470_v11 = vpop.permute.xlu1 %469  ;;  %v460_v12 = vpop.permute.xlu0 %459 }
  0xbe   : > { %v637_v18 = vmul.f32 %v460_v12, %v385_v13  ;;  %v639_v21 = vmul.f32 %v470_v11, %v387_v15  ;;  %v402_v12 = vld [vmem:[%s1102_s16 + $0x88] sm:$0xff] }
  0xc1   : > { %v475_v16 = vpop.permute.xlu1 %474  ;;  %v465_v17 = vpop.permute.xlu0 %464 }
  0xc2   : > { %v638_v19 = vmul.f32 %v465_v17, %v386_v14  ;;  %v640_v26 = vmul.f32 %v475_v16, %v388_v20  ;;  %v403_v17 = vld [vmem:[%s1102_s16 + $0x90] sm:$0xff]  ;;  %v404_v20 = vld [vmem:[%s1102_s16 + $0x98] sm:$0xff] }
  0xc4   : > { %v673_v22 = vadd.f32 %v638_v19, %v637_v18 }
  0xc5   : > { %v485_v23 = vpop.permute.xlu1 %484  ;;  %v480_v24 = vpop.permute.xlu0 %479 }
  0xc6   : > { %v674_v27 = vadd.f32 %v673_v22, %v639_v21  ;;  %v641_v29 = vmul.f32 %v480_v24, %v389_v25  ;;  %v642_v34 = vmul.f32 %v485_v23, %v390_v28  ;;  %v405_v25 = vld [vmem:[%s1102_s16 + $0xa0] sm:$0xff]  ;;  %v406_v28 = vld [vmem:[%s1102_s16 + $0xa8] sm:$0xff] }
  0xc8   : > { %v675_v30 = vadd.f32 %v674_v27, %v640_v26 }
  0xc9   : > { %v495_v31 = vpop.permute.xlu1 %494  ;;  %v490_v32 = vpop.permute.xlu0 %489 }
  0xca   : > { %v676_v35 = vadd.f32 %v675_v30, %v641_v29  ;;  %v643_v37 = vmul.f32 %v490_v32, %v391_v33  ;;  %v644_v42 = vmul.f32 %v495_v31, %v392_v36  ;;  %v407_v33 = vld [vmem:[%s1102_s16 + $0xb0] sm:$0xff]  ;;  %v408_v36 = vld [vmem:[%s1102_s16 + $0xb8] sm:$0xff] }
  0xcc   : > { %v677_v38 = vadd.f32 %v676_v35, %v642_v34 }
  0xcd   : > { %v505_v39 = vpop.permute.xlu1 %504  ;;  %v500_v40 = vpop.permute.xlu0 %499 }
  0xce   : > { %v678_v43 = vadd.f32 %v677_v38, %v643_v37  ;;  %v645_v45 = vmul.f32 %v500_v40, %v393_v41  ;;  %v646_v50 = vmul.f32 %v505_v39, %v394_v44  ;;  %v409_v41 = vld [vmem:[%s1102_s16 + $0xc0] sm:$0xff]  ;;  %v410_v44 = vld [vmem:[%s1102_s16 + $0xc8] sm:$0xff] }
  0xd0   : > { %v679_v46 = vadd.f32 %v678_v43, %v644_v42 }
  0xd1   : > { %v515_v47 = vpop.permute.xlu1 %514  ;;  %v510_v48 = vpop.permute.xlu0 %509 }
  0xd2   : > { %v680_v51 = vadd.f32 %v679_v46, %v645_v45  ;;  %v647_v53 = vmul.f32 %v510_v48, %v395_v49  ;;  %v648_v58 = vmul.f32 %v515_v47, %v396_v52  ;;  %v411_v49 = vld [vmem:[%s1102_s16 + $0xd0] sm:$0xff]  ;;  %v412_v52 = vld [vmem:[%s1102_s16 + $0xd8] sm:$0xff] }
  0xd4   : > { %v681_v54 = vadd.f32 %v680_v51, %v646_v50 }
  0xd5   : > { %v525_v55 = vpop.permute.xlu1 %524  ;;  %v520_v56 = vpop.permute.xlu0 %519 }
  0xd6   : > { %v682_v59 = vadd.f32 %v681_v54, %v647_v53  ;;  %v649_v61 = vmul.f32 %v520_v56, %v397_v57  ;;  %v650_v2 = vmul.f32 %v525_v55, %v398_v60  ;;  %v413_v57 = vld [vmem:[%s1102_s16 + $0xe0] sm:$0xff]  ;;  %v414_v60 = vld [vmem:[%s1102_s16 + $0xe8] sm:$0xff] }
  0xd8   : > { %v683_v62 = vadd.f32 %v682_v59, %v648_v58 }
  0xd9   : > { %v535_v63 = vpop.permute.xlu1 %534  ;;  %v530_v0 = vpop.permute.xlu0 %529 }
  0xda   : > { %v684_v3 = vadd.f32 %v683_v62, %v649_v61  ;;  %v651_v5 = vmul.f32 %v530_v0, %v399_v1  ;;  %v652_v10 = vmul.f32 %v535_v63, %v400_v4  ;;  %v415_v1 = vld [vmem:[%s1102_s16 + $0xf0] sm:$0xff]  ;;  %v416_v4 = vld [vmem:[%s1102_s16 + $0xf8] sm:$0xff] }
  0xdc   : > { %v685_v6 = vadd.f32 %v684_v3, %v650_v2 }
  0xdd   : > { %v545_v7 = vpop.permute.xlu1 %544  ;;  %v540_v8 = vpop.permute.xlu0 %539 }
  0xde   : > { %v686_v11 = vadd.f32 %v685_v6, %v651_v5  ;;  %v653_v13 = vmul.f32 %v540_v8, %v401_v9  ;;  %v654_v18 = vmul.f32 %v545_v7, %v402_v12  ;;  %v417_v9 = vld [vmem:[%s1102_s16 + $0x100] sm:$0xff]  ;;  %v418_v12 = vld [vmem:[%s1102_s16 + $0x108] sm:$0xff] }
  0xe0   : > { %v687_v14 = vadd.f32 %v686_v11, %v652_v10 }
  0xe1   : > { %v555_v15 = vpop.permute.xlu1 %554  ;;  %v550_v16 = vpop.permute.xlu0 %549 }
  0xe2   : > { %v688_v19 = vadd.f32 %v687_v14, %v653_v13  ;;  %v655_v21 = vmul.f32 %v550_v16, %v403_v17  ;;  %v656_v26 = vmul.f32 %v555_v15, %v404_v20  ;;  %v419_v16 = vld [vmem:[%s1102_s16 + $0x110] sm:$0xff]  ;;  %v420_v20 = vld [vmem:[%s1102_s16 + $0x118] sm:$0xff] }
  0xe4   : > { %v689_v22 = vadd.f32 %v688_v19, %v654_v18 }
  0xe5   : > { %v565_v23 = vpop.permute.xlu1 %564  ;;  %v560_v24 = vpop.permute.xlu0 %559 }
  0xe6   : > { %v690_v27 = vadd.f32 %v689_v22, %v655_v21  ;;  %v657_v29 = vmul.f32 %v560_v24, %v405_v25  ;;  %v658_v34 = vmul.f32 %v565_v23, %v406_v28 }
  0xe8   : > { %v691_v30 = vadd.f32 %v690_v27, %v656_v26  ;;  %v720_v26 = vlaneseq }
  0xe9   : > { %v575_v31 = vpop.permute.xlu1 %574  ;;  %v570_v32 = vpop.permute.xlu0 %569 }
  0xea   : > { %v692_v35 = vadd.f32 %v691_v30, %v657_v29  ;;  %v659_v37 = vmul.f32 %v570_v32, %v407_v33  ;;  %v660_v42 = vmul.f32 %v575_v31, %v408_v36  ;;  %v721_v29 = vshrl.u32 %v720_v26, 7 }
  0xec   : > { %v693_v38 = vadd.f32 %v692_v35, %v658_v34  ;;  %v722_v31 = vsub.s32 0, %v721_v29 }
  0xed   : > { %v585_v39 = vpop.permute.xlu1 %584  ;;  %v580_v40 = vpop.permute.xlu0 %579 }
  0xee   : > { %v694_v43 = vadd.f32 %v693_v38, %v659_v37  ;;  %v661_v45 = vmul.f32 %v580_v40, %v409_v41  ;;  %v662_v50 = vmul.f32 %v585_v39, %v410_v44  ;;  %v725_v37 = vld [vmem:[%s381_s22] sm:$0x1] }
  0xf0   : > { %v695_v46 = vadd.f32 %v694_v43, %v660_v42 }
  0xf1   : > { %v595_v47 = vpop.permute.xlu1 %594  ;;  %v590_v48 = vpop.permute.xlu0 %589 }
  0xf2   : > { %v696_v51 = vadd.f32 %v695_v46, %v661_v45  ;;  %v663_v53 = vmul.f32 %v590_v48, %v411_v49  ;;  %v664_v58 = vmul.f32 %v595_v47, %v412_v52 }
  0xf4   : > { %v697_v54 = vadd.f32 %v696_v51, %v662_v50 }
  0xf5   : > { %v605_v55 = vpop.permute.xlu1 %604  ;;  %v600_v56 = vpop.permute.xlu0 %599 }
  0xf6   : > { %v698_v59 = vadd.f32 %v697_v54, %v663_v53  ;;  %v665_v61 = vmul.f32 %v600_v56, %v413_v57  ;;  %v666_v2 = vmul.f32 %v605_v55, %v414_v60 }
  0xf8   : > { %v699_v62 = vadd.f32 %v698_v59, %v664_v58 }
  0xf9   : > { %v615_v63 = vpop.permute.xlu1 %614  ;;  %v610_v0 = vpop.permute.xlu0 %609 }
  0xfa   : > { %v700_v3 = vadd.f32 %v699_v62, %v665_v61  ;;  %v667_v5 = vmul.f32 %v610_v0, %v415_v1  ;;  %v668_v10 = vmul.f32 %v615_v63, %v416_v4 }
  0xfc   : > { %v701_v6 = vadd.f32 %v700_v3, %v666_v2 }
  0xfd   : > { %v625_v7 = vpop.permute.xlu1 %624  ;;  %v620_v8 = vpop.permute.xlu0 %619 }
  0xfe   : > { %v702_v11 = vadd.f32 %v701_v6, %v667_v5  ;;  %v669_v13 = vmul.f32 %v620_v8, %v417_v9  ;;  %v670_v17 = vmul.f32 %v625_v7, %v418_v12 }
 0x100   : > { %v703_v14 = vadd.f32 %v702_v11, %v668_v10 }
 0x101   : > { %v630_v15 = vpop.permute.xlu0 %629  ;;  %v635_v19 = vpop.permute.xlu1 %634 }
 0x102   : > { %v704_v18 = vadd.f32 %v703_v14, %v669_v13  ;;  %v671_v21 = vmul.f32 %v630_v15, %v419_v16  ;;  %v672_v23 = vmul.f32 %v635_v19, %v420_v20 }
 0x104   : > { %v705_v22 = vadd.f32 %v704_v18, %v670_v17 }
 0x105   : > { %v718_v33 = vpop.permute.xlu0 %717 }
 0x106   : > { %v706_v24 = vadd.f32 %v705_v22, %v671_v21  ;;  %v723_v36 = vrot.slane %v718_v33, %v722_v31 }
 0x108   : > { %v707_v25 = vadd.f32 %v706_v24, %v672_v23 }
 0x10a   : > { %v708_v27 = vrot.slane %v707_v25, 4 }
 0x10c   : > { %v709_v28 = vadd.f32 %v708_v27, %v707_v25 }
 0x10e   : > { %v710_v30 = vrot.slane %v709_v28, 2 }
 0x110   : > { %v711_v32 = vadd.f32 %v710_v30, %v709_v28 }
 0x112   : > { %v712_v34 = vrot.slane %v711_v32, 1 }
 0x114   : > { %v713_v35 = vadd.f32 %v712_v34, %v711_v32 }
 0x116   : > { %v724_v38 = vadd.f32 %v723_v36, %v713_v35 }
 0x118   : > { %v726_v39 = vadd.f32 %v725_v37, %v724_v38 }
 0x11a   : > { %v727_v40 = vmax.f32 %v726_v39, 0.0 }
 0x11c   : > { %728 = vst [vmem:[%s384_s26] sm:$0x1] %v727_v40 }
 0x11d PF: > { %p13_p9 = scmp.ge.s32.totalorder %s898_s20, 6   ;;  %s1165_s17 = smov %s846_s18 }
 0x11e   : > { %s1166_s18 = smov %s907_s23  ;;  %s1167_s19 = smov %s898_s20 }
 0x11f   :  { %15 = sbr.rel (!%p13_p9) target bundleno = 5 (0x5), region = 112 }

</bundles_post_ra>
